<compile_context>
chip_gen: v5e
topology: v5e:2x2
jax: 0.10.0
libtpu: 0.0.40
codegen_flags: <defaults>
</compile_context>

<pallas_src>
import numpy as np
import jax
import jax.numpy as jnp
from jax import lax
from jax.experimental import pallas as pl
from jax.experimental.pallas import tpu as pltpu

# Izhikevich neuron parameters (deterministic, shared by all neurons)
A_PARAM = 0.02
B_PARAM = 0.2
C_PARAM = -65.0
D_PARAM = 8.0

_LANES = 128      # TPU lane width
_ROWS = 8         # sublane tile: timesteps per statically-unrolled inner chunk
_T_TILE = 32      # timesteps per grid step (multiple of _ROWS)


def _network_kernel(inp_ref, syn_ref, out_ref, w_ref, v_ref, u_ref, pc_ref, dma_sem):
    """One grid step = _T_TILE sequential Izhikevich timesteps, vectorized over neurons.

    Scratch (persists across grid steps):
      w_ref  : (2, Np, Np) masked weights: w_ref[0] = W_cur (j < i), w_ref[1] = W_prev (j >= i)
      v_ref, u_ref : (1, Np) membrane potential / recovery variable
      pc_ref : (1, Np) carried previous-step spike contribution (s_prev @ W_prev)
      dma_sem: DMA semaphore for the one-time HBM -> VMEM weight copy
    """
    t_tile, n_pad = inp_ref.shape
    n_chunks = t_tile // _ROWS

    @pl.when(pl.program_id(0) == 0)
    def _init():
        # One-time: DMA raw synapses from HBM into the "prev" slab, then build the
        # strictly-lower-triangular "cur" slab in place.
        cp = pltpu.make_async_copy(syn_ref, w_ref.at[1], dma_sem)
        cp.start()
        cp.wait()
        syn = w_ref[1]
        j_idx = lax.broadcasted_iota(jnp.int32, (n_pad, n_pad), 0)
        i_idx = lax.broadcasted_iota(jnp.int32, (n_pad, n_pad), 1)
        cur = jnp.where(j_idx < i_idx, syn, 0.0)   # neuron i sees cur-step spikes of j < i
        w_ref[0] = cur
        w_ref[1] = syn - cur                       # prev-step spikes of j >= i (incl. self)
        v_ref[...] = jnp.full((1, n_pad), -65.0, jnp.float32)
        u_ref[...] = jnp.full((1, n_pad), B_PARAM * -65.0, jnp.float32)
        pc_ref[...] = jnp.zeros((1, n_pad), jnp.float32)

    def chunk_body(c, carry):
        v, u, pc = carry
        base = pl.multiple_of(c * _ROWS, _ROWS)
        inp_tile = inp_ref[pl.ds(base, _ROWS), :]          # one aligned (8, Np) tile load
        rows = []
        for k in range(_ROWS):                              # statically unrolled
            spiked = v >= 30.0
            s_cur = spiked.astype(jnp.float32)
            # current-step contribution (j < i): on the serial critical path, K = Np
            cur_c = jnp.dot(s_cur, w_ref[0], preferred_element_type=jnp.float32)
            i_total = inp_tile[k:k + 1, :] + cur_c + pc
            # reset for neurons that crossed threshold
            v_r = jnp.where(spiked, C_PARAM, v)
            u_r = jnp.where(spiked, u + D_PARAM, u)
            # literal Izhikevich update (same op order as the reference)
            v = v_r + 0.04 * v_r * v_r + 5.0 * v_r + 140.0 - u_r + i_total
            u = u_r + A_PARAM * (B_PARAM * v - u_r)
            # previous-step contribution for the NEXT timestep (j >= i): computed one
            # step early, off this step's critical path.
            pc = jnp.dot(s_cur, w_ref[1], preferred_element_type=jnp.float32)
            rows.append(v)
        # single full-tile, unmasked store per chunk
        out_ref[pl.ds(base, _ROWS), :] = jnp.concatenate(rows, axis=0)
        return (v, u, pc)

    v, u, pc = lax.fori_loop(0, n_chunks, chunk_body,
                             (v_ref[...], u_ref[...], pc_ref[...]))
    v_ref[...] = v
    u_ref[...] = u
    pc_ref[...] = pc


def network_forward(inputs, synapses):
    """inputs: (T, N) float32, synapses: (N, N) float32 -> (T, N) float32."""
    inputs = jnp.asarray(inputs, jnp.float32)
    synapses = jnp.asarray(synapses, jnp.float32)
    T, N = inputs.shape

    # pad neurons to the 128-lane width, timesteps to a multiple of the row tile
    n_pad = max(_LANES, ((N + _LANES - 1) // _LANES) * _LANES)
    t_pad = ((T + _T_TILE - 1) // _T_TILE) * _T_TILE

    # zero-padded synapse rows/cols and zero input keep padded neurons isolated
    inp_p = jnp.zeros((t_pad, n_pad), jnp.float32).at[:T, :N].set(inputs)
    syn_p = jnp.zeros((n_pad, n_pad), jnp.float32).at[:N, :N].set(synapses)

    # Explicit VMEM budget (v5e scoped default is only 16 MiB; v7x physical is 64 MiB):
    # weight scratch + double-buffered in/out tiles + state, plus compiler headroom.
    # TODO(synk): for very large N (weights exceeding VMEM) add a column-tiling grid
    # axis over the weight matrix; not needed at these sizes.
    vmem_need = (2 * n_pad * n_pad * 4            # w scratch (W_cur + W_prev)
                 + 4 * _T_TILE * n_pad * 4        # double-buffered input + output tiles
                 + 4 * n_pad * 4)                 # v / u / pc state
    vmem_limit = int(min(vmem_need + (8 << 20), 96 << 20))

    out = pl.pallas_call(
        _network_kernel,
        out_shape=jax.ShapeDtypeStruct((t_pad, n_pad), jnp.float32),
        grid_spec=pltpu.PrefetchScalarGridSpec(
            num_scalar_prefetch=0,
            grid=(t_pad // _T_TILE,),
            in_specs=[
                pl.BlockSpec((_T_TILE, n_pad), lambda t: (t, 0)),  # inputs, streamed over T
                pl.BlockSpec(memory_space=pl.ANY),                 # raw synapses stay in HBM
            ],
            out_specs=pl.BlockSpec((_T_TILE, n_pad), lambda t: (t, 0)),
            scratch_shapes=[
                pltpu.VMEM((2, n_pad, n_pad), jnp.float32),  # [W_cur ; W_prev] masked weights
                pltpu.VMEM((1, n_pad), jnp.float32),         # v
                pltpu.VMEM((1, n_pad), jnp.float32),         # u
                pltpu.VMEM((1, n_pad), jnp.float32),         # carried prev-spike contribution
                pltpu.SemaphoreType.DMA(()),                 # one-time weight DMA
            ],
        ),
        compiler_params=pltpu.CompilerParams(
            dimension_semantics=("arbitrary",),   # T is a strictly sequential recurrence
            vmem_limit_bytes=vmem_limit,
        ),
    )(inp_p, syn_p)

    return out[:T, :N]


def _torch_reference(inputs, synapses):
    """Literal (per-neuron, per-timestep) translation of the PyTorch forward."""
    inputs = np.asarray(inputs, np.float32)
    syn = np.asarray(synapses, np.float32)
    T, N = inputs.shape
    v = np.full(N, -65.0, np.float32)
    u = np.full(N, B_PARAM * -65.0, np.float32)
    last_spike = np.zeros(N, np.float32)
    out = np.zeros((T, N), np.float32)
    for t in range(T):
        I = inputs[t]
        for i in range(N):
            input_current = I[i] + np.sum(syn[:, i] * last_spike)
            if v[i] >= 30.0:
                v[i] = C_PARAM
                u[i] = u[i] + D_PARAM
                last_spike[i] = 1.0
            else:
                last_spike[i] = 0.0
            v[i] = v[i] + 0.04 * v[i] ** 2 + 5.0 * v[i] + 140.0 - u[i] + input_current
            u[i] = u[i] + A_PARAM * (B_PARAM * v[i] - u[i])
            out[t, i] = v[i]
    return out


if __name__ == "__main__":
    T = 8            # "batch_size" (number of timesteps) in the PyTorch forward
    N = 16           # num_neurons

    key = jax.random.PRNGKey(0)
    k_syn, k_in = jax.random.split(key)

    # deterministic parameter init: torch.rand(N, N) * 0.5  ->  uniform[0, 0.5)
    synapses = jax.random.uniform(k_syn, (N, N), jnp.float32) * 0.5

    # deterministic inputs; give the first timestep a big kick on even neurons so the
    # spike/reset path and the triangular spike-propagation logic are exercised.
    inputs = jax.random.normal(k_in, (T, N), jnp.float32) * 2.0
    inputs = inputs.at[0, ::2].add(120.0)

    out = network_forward(inputs, synapses)
    out = jax.block_until_ready(out)

    ref = _torch_reference(np.asarray(inputs), np.asarray(synapses))
    np.testing.assert_allclose(np.asarray(out), ref, rtol=1e-4, atol=1e-3)

    print("KERNEL_OK")
</pallas_src>

<mosaic_0001>
module attributes {stable_mosaic.version = 11 : i64} {
  func.func @_network_kernel(%arg0: i32, %arg1: memref<32x128xf32, #tpu.memory_space<vmem>>, %arg2: memref<128x128xf32, #tpu.memory_space<any>>, %arg3: memref<32x128xf32, #tpu.memory_space<vmem>>, %arg4: memref<2x128x128xf32, #tpu.memory_space<vmem>>, %arg5: memref<1x128xf32, #tpu.memory_space<vmem>>, %arg6: memref<1x128xf32, #tpu.memory_space<vmem>>, %arg7: memref<1x128xf32, #tpu.memory_space<vmem>>, %arg8: memref<!tpu.dma_semaphore, #tpu.memory_space<semaphore_mem>>) attributes {dimension_semantics = [#tpu.dimension_semantics<arbitrary>], iteration_bounds = array<i64: 1>, scalar_prefetch = 0 : i64, scratch_operands = 5 : i64, tpu.core_type = #tpu.core_type<tc>, window_params = [{transform_indices = @transform_0, window_bounds = array<i64: 32, 128>}, {}, {transform_indices = @transform_2, window_bounds = array<i64: 32, 128>}]} {
    %c0_i32 = arith.constant 0 : i32
    %0 = arith.cmpi eq, %arg0, %c0_i32 : i32
    %1 = arith.extui %0 : i1 to i32
    %c0_i32_0 = arith.constant 0 : i32
    %2 = arith.cmpi ne, %1, %c0_i32_0 : i32
    scf.if %2 {
      %c1_i32_14 = arith.constant 1 : i32
      %c0_i32_15 = arith.constant 0 : i32
      %c0_i32_16 = arith.constant 0 : i32
      %11 = tpu.memref_slice %arg4[%c1_i32_14, %c0_i32_15, %c0_i32_16] : memref<2x128x128xf32, #tpu.memory_space<vmem>> -> memref<1x128x128xf32, #tpu.memory_space<vmem>>
      %12 = tpu.memref_squeeze %11 : memref<1x128x128xf32, #tpu.memory_space<vmem>> -> memref<128x128xf32, #tpu.memory_space<vmem>>
      tpu.enqueue_dma source(%arg2 : memref<128x128xf32, #tpu.memory_space<any>>) target(%12 : memref<128x128xf32, #tpu.memory_space<vmem>>) target_semaphore(%arg8 : memref<!tpu.dma_semaphore, #tpu.memory_space<semaphore_mem>>)
      %c1_i32_17 = arith.constant 1 : i32
      %c0_i32_18 = arith.constant 0 : i32
      %c0_i32_19 = arith.constant 0 : i32
      %13 = tpu.memref_slice %arg4[%c1_i32_17, %c0_i32_18, %c0_i32_19] : memref<2x128x128xf32, #tpu.memory_space<vmem>> -> memref<1x128x128xf32, #tpu.memory_space<vmem>>
      %14 = tpu.memref_squeeze %13 : memref<1x128x128xf32, #tpu.memory_space<vmem>> -> memref<128x128xf32, #tpu.memory_space<vmem>>
      tpu.wait_dma2 semaphore(%arg8 : memref<!tpu.dma_semaphore, #tpu.memory_space<semaphore_mem>>) src(%arg2 : memref<128x128xf32, #tpu.memory_space<any>>) dst(%14 : memref<128x128xf32, #tpu.memory_space<vmem>>)
      %c1 = arith.constant 1 : index
      %c0_20 = arith.constant 0 : index
      %c0_21 = arith.constant 0 : index
      %15 = vector.load %arg4[%c1, %c0_20, %c0_21] : memref<2x128x128xf32, #tpu.memory_space<vmem>>, vector<1x128x128xf32>
      %16 = vector.shape_cast %15 : vector<1x128x128xf32> to vector<128x128xf32>
      %17 = tpu.iota {dimensions = array<i32: 0>} : vector<128x128xi32>
      %18 = tpu.iota {dimensions = array<i32: 1>} : vector<128x128xi32>
      %19 = arith.cmpi slt, %17, %18 : vector<128x128xi32>
      %cst = arith.constant 0.000000e+00 : f32
      %20 = vector.broadcast %cst : f32 to vector<128x128xf32>
      %21 = arith.select %19, %16, %20 : vector<128x128xi1>, vector<128x128xf32>
      %c0_22 = arith.constant 0 : index
      %c0_23 = arith.constant 0 : index
      %c0_24 = arith.constant 0 : index
      %22 = vector.load %arg4[%c0_22, %c0_23, %c0_24] : memref<2x128x128xf32, #tpu.memory_space<vmem>>, vector<1x128x128xf32>
      %23 = vector.shape_cast %22 : vector<1x128x128xf32> to vector<128x128xf32>
      %24 = vector.shape_cast %21 : vector<128x128xf32> to vector<1x128x128xf32>
      tpu.vector_store %arg4[%c0_22, %c0_23, %c0_24], %24 {strides = array<i32>} : memref<2x128x128xf32, #tpu.memory_space<vmem>>, vector<1x128x128xf32>,
      %25 = arith.subf %16, %21 : vector<128x128xf32>
      %c1_25 = arith.constant 1 : index
      %c0_26 = arith.constant 0 : index
      %c0_27 = arith.constant 0 : index
      %26 = vector.load %arg4[%c1_25, %c0_26, %c0_27] : memref<2x128x128xf32, #tpu.memory_space<vmem>>, vector<1x128x128xf32>
      %27 = vector.shape_cast %26 : vector<1x128x128xf32> to vector<128x128xf32>
      %28 = vector.shape_cast %25 : vector<128x128xf32> to vector<1x128x128xf32>
      tpu.vector_store %arg4[%c1_25, %c0_26, %c0_27], %28 {strides = array<i32>} : memref<2x128x128xf32, #tpu.memory_space<vmem>>, vector<1x128x128xf32>,
      %cst_28 = arith.constant -6.500000e+01 : f32
      %29 = vector.broadcast %cst_28 : f32 to vector<1x128xf32>
      %c0_29 = arith.constant 0 : index
      %c0_30 = arith.constant 0 : index
      %30 = vector.load %arg5[%c0_29, %c0_30] : memref<1x128xf32, #tpu.memory_space<vmem>>, vector<1x128xf32>
      tpu.vector_store %arg5[%c0_29, %c0_30], %29 {strides = array<i32>} : memref<1x128xf32, #tpu.memory_space<vmem>>, vector<1x128xf32>,
      %cst_31 = arith.constant -1.300000e+01 : f32
      %31 = vector.broadcast %cst_31 : f32 to vector<1x128xf32>
      %c0_32 = arith.constant 0 : index
      %c0_33 = arith.constant 0 : index
      %32 = vector.load %arg6[%c0_32, %c0_33] : memref<1x128xf32, #tpu.memory_space<vmem>>, vector<1x128xf32>
      tpu.vector_store %arg6[%c0_32, %c0_33], %31 {strides = array<i32>} : memref<1x128xf32, #tpu.memory_space<vmem>>, vector<1x128xf32>,
      %cst_34 = arith.constant 0.000000e+00 : f32
      %33 = vector.broadcast %cst_34 : f32 to vector<1x128xf32>
      %c0_35 = arith.constant 0 : index
      %c0_36 = arith.constant 0 : index
      %34 = vector.load %arg7[%c0_35, %c0_36] : memref<1x128xf32, #tpu.memory_space<vmem>>, vector<1x128xf32>
      tpu.vector_store %arg7[%c0_35, %c0_36], %33 {strides = array<i32>} : memref<1x128xf32, #tpu.memory_space<vmem>>, vector<1x128xf32>,
    } else {
    }
    %c0 = arith.constant 0 : index
    %c0_1 = arith.constant 0 : index
    %3 = vector.load %arg5[%c0, %c0_1] : memref<1x128xf32, #tpu.memory_space<vmem>>, vector<1x128xf32>
    %c0_2 = arith.constant 0 : index
    %c0_3 = arith.constant 0 : index
    %4 = vector.load %arg6[%c0_2, %c0_3] : memref<1x128xf32, #tpu.memory_space<vmem>>, vector<1x128xf32>
    %c0_4 = arith.constant 0 : index
    %c0_5 = arith.constant 0 : index
    %5 = vector.load %arg7[%c0_4, %c0_5] : memref<1x128xf32, #tpu.memory_space<vmem>>, vector<1x128xf32>
    %c0_i32_6 = arith.constant 0 : i32
    %c4_i32 = arith.constant 4 : i32
    %6 = arith.addi %c0_i32_6, %c4_i32 : i32
    %c1_i32 = arith.constant 1 : i32
    %7:3 = scf.for %arg9 = %c0_i32_6 to %6 step %c1_i32 iter_args(%arg10 = %3, %arg11 = %4, %arg12 = %5) -> (vector<1x128xf32>, vector<1x128xf32>, vector<1x128xf32>)  : i32 {
      %c8_i32 = arith.constant 8 : i32
      %11 = arith.muli %arg9, %c8_i32 : i32
      %12 = tpu.assume_multiple %11, 8 : i32
      %13 = arith.index_cast %12 : i32 to index
      %c0_14 = arith.constant 0 : index
      %14 = vector.load %arg1[%13, %c0_14] : memref<32x128xf32, #tpu.memory_space<vmem>>, vector<8x128xf32>
      %cst = arith.constant 3.000000e+01 : f32
      %15 = vector.broadcast %cst : f32 to vector<1x128xf32>
      %16 = arith.cmpf oge, %arg10, %15 : vector<1x128xf32>
      %17 = arith.extui %16 : vector<1x128xi1> to vector<1x128xi32>
      %18 = arith.sitofp %17 : vector<1x128xi32> to vector<1x128xf32>
      %c0_15 = arith.constant 0 : index
      %c0_16 = arith.constant 0 : index
      %c0_17 = arith.constant 0 : index
      %19 = vector.load %arg4[%c0_15, %c0_16, %c0_17] : memref<2x128x128xf32, #tpu.memory_space<vmem>>, vector<1x128x128xf32>
      %20 = vector.shape_cast %19 : vector<1x128x128xf32> to vector<128x128xf32>
      %cst_18 = arith.constant dense<0.000000e+00> : vector<1x128xf32>
      %21 = tpu.matmul %18, %20, %cst_18 {dimension_numbers = #tpu.dot_dimension_numbers<[1], [0], [0], [1], [0, 0, 1, 1], [], []>} : vector<1x128xf32>, vector<128x128xf32>, vector<1x128xf32> -> vector<1x128xf32>
      %22 = vector.extract_strided_slice %14 {offsets = [0, 0], sizes = [1, 128], strides = [1, 1]} : vector<8x128xf32> to vector<1x128xf32>
      %23 = arith.addf %22, %21 : vector<1x128xf32>
      %24 = arith.addf %23, %arg12 : vector<1x128xf32>
      %cst_19 = arith.constant -6.500000e+01 : f32
      %25 = vector.broadcast %cst_19 : f32 to vector<1x128xf32>
      %26 = arith.select %16, %25, %arg10 : vector<1x128xi1>, vector<1x128xf32>
      %cst_20 = arith.constant 8.000000e+00 : f32
      %27 = vector.broadcast %cst_20 : f32 to vector<1x128xf32>
      %28 = arith.addf %arg11, %27 : vector<1x128xf32>
      %29 = arith.select %16, %28, %arg11 : vector<1x128xi1>, vector<1x128xf32>
      %cst_21 = arith.constant 4.000000e-02 : f32
      %30 = vector.broadcast %cst_21 : f32 to vector<1x128xf32>
      %31 = arith.mulf %30, %26 : vector<1x128xf32>
      %32 = arith.mulf %31, %26 : vector<1x128xf32>
      %33 = arith.addf %26, %32 : vector<1x128xf32>
      %cst_22 = arith.constant 5.000000e+00 : f32
      %34 = vector.broadcast %cst_22 : f32 to vector<1x128xf32>
      %35 = arith.mulf %34, %26 : vector<1x128xf32>
      %36 = arith.addf %33, %35 : vector<1x128xf32>
      %cst_23 = arith.constant 1.400000e+02 : f32
      %37 = vector.broadcast %cst_23 : f32 to vector<1x128xf32>
      %38 = arith.addf %36, %37 : vector<1x128xf32>
      %39 = arith.subf %38, %29 : vector<1x128xf32>
      %40 = arith.addf %39, %24 : vector<1x128xf32>
      %cst_24 = arith.constant 2.000000e-01 : f32
      %41 = vector.broadcast %cst_24 : f32 to vector<1x128xf32>
      %42 = arith.mulf %41, %40 : vector<1x128xf32>
      %43 = arith.subf %42, %29 : vector<1x128xf32>
      %cst_25 = arith.constant 2.000000e-02 : f32
      %44 = vector.broadcast %cst_25 : f32 to vector<1x128xf32>
      %45 = arith.mulf %44, %43 : vector<1x128xf32>
      %46 = arith.addf %29, %45 : vector<1x128xf32>
      %c1 = arith.constant 1 : index
      %c0_26 = arith.constant 0 : index
      %c0_27 = arith.constant 0 : index
      %47 = vector.load %arg4[%c1, %c0_26, %c0_27] : memref<2x128x128xf32, #tpu.memory_space<vmem>>, vector<1x128x128xf32>
      %48 = vector.shape_cast %47 : vector<1x128x128xf32> to vector<128x128xf32>
      %cst_28 = arith.constant dense<0.000000e+00> : vector<1x128xf32>
      %49 = tpu.matmul %18, %48, %cst_28 {dimension_numbers = #tpu.dot_dimension_numbers<[1], [0], [0], [1], [0, 0, 1, 1], [], []>} : vector<1x128xf32>, vector<128x128xf32>, vector<1x128xf32> -> vector<1x128xf32>
      %cst_29 = arith.constant 3.000000e+01 : f32
      %50 = vector.broadcast %cst_29 : f32 to vector<1x128xf32>
      %51 = arith.cmpf oge, %40, %50 : vector<1x128xf32>
      %52 = arith.extui %51 : vector<1x128xi1> to vector<1x128xi32>
      %53 = arith.sitofp %52 : vector<1x128xi32> to vector<1x128xf32>
      %c0_30 = arith.constant 0 : index
      %c0_31 = arith.constant 0 : index
      %c0_32 = arith.constant 0 : index
      %54 = vector.load %arg4[%c0_30, %c0_31, %c0_32] : memref<2x128x128xf32, #tpu.memory_space<vmem>>, vector<1x128x128xf32>
      %55 = vector.shape_cast %54 : vector<1x128x128xf32> to vector<128x128xf32>
      %cst_33 = arith.constant dense<0.000000e+00> : vector<1x128xf32>
      %56 = tpu.matmul %53, %55, %cst_33 {dimension_numbers = #tpu.dot_dimension_numbers<[1], [0], [0], [1], [0, 0, 1, 1], [], []>} : vector<1x128xf32>, vector<128x128xf32>, vector<1x128xf32> -> vector<1x128xf32>
      %57 = vector.extract_strided_slice %14 {offsets = [1, 0], sizes = [1, 128], strides = [1, 1]} : vector<8x128xf32> to vector<1x128xf32>
      %58 = arith.addf %57, %56 : vector<1x128xf32>
      %59 = arith.addf %58, %49 : vector<1x128xf32>
      %cst_34 = arith.constant -6.500000e+01 : f32
      %60 = vector.broadcast %cst_34 : f32 to vector<1x128xf32>
      %61 = arith.select %51, %60, %40 : vector<1x128xi1>, vector<1x128xf32>
      %cst_35 = arith.constant 8.000000e+00 : f32
      %62 = vector.broadcast %cst_35 : f32 to vector<1x128xf32>
      %63 = arith.addf %46, %62 : vector<1x128xf32>
      %64 = arith.select %51, %63, %46 : vector<1x128xi1>, vector<1x128xf32>
      %cst_36 = arith.constant 4.000000e-02 : f32
      %65 = vector.broadcast %cst_36 : f32 to vector<1x128xf32>
      %66 = arith.mulf %65, %61 : vector<1x128xf32>
      %67 = arith.mulf %66, %61 : vector<1x128xf32>
      %68 = arith.addf %61, %67 : vector<1x128xf32>
      %cst_37 = arith.constant 5.000000e+00 : f32
      %69 = vector.broadcast %cst_37 : f32 to vector<1x128xf32>
      %70 = arith.mulf %69, %61 : vector<1x128xf32>
      %71 = arith.addf %68, %70 : vector<1x128xf32>
      %cst_38 = arith.constant 1.400000e+02 : f32
      %72 = vector.broadcast %cst_38 : f32 to vector<1x128xf32>
      %73 = arith.addf %71, %72 : vector<1x128xf32>
      %74 = arith.subf %73, %64 : vector<1x128xf32>
      %75 = arith.addf %74, %59 : vector<1x128xf32>
      %cst_39 = arith.constant 2.000000e-01 : f32
      %76 = vector.broadcast %cst_39 : f32 to vector<1x128xf32>
      %77 = arith.mulf %76, %75 : vector<1x128xf32>
      %78 = arith.subf %77, %64 : vector<1x128xf32>
      %cst_40 = arith.constant 2.000000e-02 : f32
      %79 = vector.broadcast %cst_40 : f32 to vector<1x128xf32>
      %80 = arith.mulf %79, %78 : vector<1x128xf32>
      %81 = arith.addf %64, %80 : vector<1x128xf32>
      %c1_41 = arith.constant 1 : index
      %c0_42 = arith.constant 0 : index
      %c0_43 = arith.constant 0 : index
      %82 = vector.load %arg4[%c1_41, %c0_42, %c0_43] : memref<2x128x128xf32, #tpu.memory_space<vmem>>, vector<1x128x128xf32>
      %83 = vector.shape_cast %82 : vector<1x128x128xf32> to vector<128x128xf32>
      %cst_44 = arith.constant dense<0.000000e+00> : vector<1x128xf32>
      %84 = tpu.matmul %53, %83, %cst_44 {dimension_numbers = #tpu.dot_dimension_numbers<[1], [0], [0], [1], [0, 0, 1, 1], [], []>} : vector<1x128xf32>, vector<128x128xf32>, vector<1x128xf32> -> vector<1x128xf32>
      %cst_45 = arith.constant 3.000000e+01 : f32
      %85 = vector.broadcast %cst_45 : f32 to vector<1x128xf32>
      %86 = arith.cmpf oge, %75, %85 : vector<1x128xf32>
      %87 = arith.extui %86 : vector<1x128xi1> to vector<1x128xi32>
      %88 = arith.sitofp %87 : vector<1x128xi32> to vector<1x128xf32>
      %c0_46 = arith.constant 0 : index
      %c0_47 = arith.constant 0 : index
      %c0_48 = arith.constant 0 : index
      %89 = vector.load %arg4[%c0_46, %c0_47, %c0_48] : memref<2x128x128xf32, #tpu.memory_space<vmem>>, vector<1x128x128xf32>
      %90 = vector.shape_cast %89 : vector<1x128x128xf32> to vector<128x128xf32>
      %cst_49 = arith.constant dense<0.000000e+00> : vector<1x128xf32>
      %91 = tpu.matmul %88, %90, %cst_49 {dimension_numbers = #tpu.dot_dimension_numbers<[1], [0], [0], [1], [0, 0, 1, 1], [], []>} : vector<1x128xf32>, vector<128x128xf32>, vector<1x128xf32> -> vector<1x128xf32>
      %92 = vector.extract_strided_slice %14 {offsets = [2, 0], sizes = [1, 128], strides = [1, 1]} : vector<8x128xf32> to vector<1x128xf32>
      %93 = arith.addf %92, %91 : vector<1x128xf32>
      %94 = arith.addf %93, %84 : vector<1x128xf32>
      %cst_50 = arith.constant -6.500000e+01 : f32
      %95 = vector.broadcast %cst_50 : f32 to vector<1x128xf32>
      %96 = arith.select %86, %95, %75 : vector<1x128xi1>, vector<1x128xf32>
      %cst_51 = arith.constant 8.000000e+00 : f32
      %97 = vector.broadcast %cst_51 : f32 to vector<1x128xf32>
      %98 = arith.addf %81, %97 : vector<1x128xf32>
      %99 = arith.select %86, %98, %81 : vector<1x128xi1>, vector<1x128xf32>
      %cst_52 = arith.constant 4.000000e-02 : f32
      %100 = vector.broadcast %cst_52 : f32 to vector<1x128xf32>
      %101 = arith.mulf %100, %96 : vector<1x128xf32>
      %102 = arith.mulf %101, %96 : vector<1x128xf32>
      %103 = arith.addf %96, %102 : vector<1x128xf32>
      %cst_53 = arith.constant 5.000000e+00 : f32
      %104 = vector.broadcast %cst_53 : f32 to vector<1x128xf32>
      %105 = arith.mulf %104, %96 : vector<1x128xf32>
      %106 = arith.addf %103, %105 : vector<1x128xf32>
      %cst_54 = arith.constant 1.400000e+02 : f32
      %107 = vector.broadcast %cst_54 : f32 to vector<1x128xf32>
      %108 = arith.addf %106, %107 : vector<1x128xf32>
      %109 = arith.subf %108, %99 : vector<1x128xf32>
      %110 = arith.addf %109, %94 : vector<1x128xf32>
      %cst_55 = arith.constant 2.000000e-01 : f32
      %111 = vector.broadcast %cst_55 : f32 to vector<1x128xf32>
      %112 = arith.mulf %111, %110 : vector<1x128xf32>
      %113 = arith.subf %112, %99 : vector<1x128xf32>
      %cst_56 = arith.constant 2.000000e-02 : f32
      %114 = vector.broadcast %cst_56 : f32 to vector<1x128xf32>
      %115 = arith.mulf %114, %113 : vector<1x128xf32>
      %116 = arith.addf %99, %115 : vector<1x128xf32>
      %c1_57 = arith.constant 1 : index
      %c0_58 = arith.constant 0 : index
      %c0_59 = arith.constant 0 : index
      %117 = vector.load %arg4[%c1_57, %c0_58, %c0_59] : memref<2x128x128xf32, #tpu.memory_space<vmem>>, vector<1x128x128xf32>
      %118 = vector.shape_cast %117 : vector<1x128x128xf32> to vector<128x128xf32>
      %cst_60 = arith.constant dense<0.000000e+00> : vector<1x128xf32>
      %119 = tpu.matmul %88, %118, %cst_60 {dimension_numbers = #tpu.dot_dimension_numbers<[1], [0], [0], [1], [0, 0, 1, 1], [], []>} : vector<1x128xf32>, vector<128x128xf32>, vector<1x128xf32> -> vector<1x128xf32>
      %cst_61 = arith.constant 3.000000e+01 : f32
      %120 = vector.broadcast %cst_61 : f32 to vector<1x128xf32>
      %121 = arith.cmpf oge, %110, %120 : vector<1x128xf32>
      %122 = arith.extui %121 : vector<1x128xi1> to vector<1x128xi32>
      %123 = arith.sitofp %122 : vector<1x128xi32> to vector<1x128xf32>
      %c0_62 = arith.constant 0 : index
      %c0_63 = arith.constant 0 : index
      %c0_64 = arith.constant 0 : index
      %124 = vector.load %arg4[%c0_62, %c0_63, %c0_64] : memref<2x128x128xf32, #tpu.memory_space<vmem>>, vector<1x128x128xf32>
      %125 = vector.shape_cast %124 : vector<1x128x128xf32> to vector<128x128xf32>
      %cst_65 = arith.constant dense<0.000000e+00> : vector<1x128xf32>
      %126 = tpu.matmul %123, %125, %cst_65 {dimension_numbers = #tpu.dot_dimension_numbers<[1], [0], [0], [1], [0, 0, 1, 1], [], []>} : vector<1x128xf32>, vector<128x128xf32>, vector<1x128xf32> -> vector<1x128xf32>
      %127 = vector.extract_strided_slice %14 {offsets = [3, 0], sizes = [1, 128], strides = [1, 1]} : vector<8x128xf32> to vector<1x128xf32>
      %128 = arith.addf %127, %126 : vector<1x128xf32>
      %129 = arith.addf %128, %119 : vector<1x128xf32>
      %cst_66 = arith.constant -6.500000e+01 : f32
      %130 = vector.broadcast %cst_66 : f32 to vector<1x128xf32>
      %131 = arith.select %121, %130, %110 : vector<1x128xi1>, vector<1x128xf32>
      %cst_67 = arith.constant 8.000000e+00 : f32
      %132 = vector.broadcast %cst_67 : f32 to vector<1x128xf32>
      %133 = arith.addf %116, %132 : vector<1x128xf32>
      %134 = arith.select %121, %133, %116 : vector<1x128xi1>, vector<1x128xf32>
      %cst_68 = arith.constant 4.000000e-02 : f32
      %135 = vector.broadcast %cst_68 : f32 to vector<1x128xf32>
      %136 = arith.mulf %135, %131 : vector<1x128xf32>
      %137 = arith.mulf %136, %131 : vector<1x128xf32>
      %138 = arith.addf %131, %137 : vector<1x128xf32>
      %cst_69 = arith.constant 5.000000e+00 : f32
      %139 = vector.broadcast %cst_69 : f32 to vector<1x128xf32>
      %140 = arith.mulf %139, %131 : vector<1x128xf32>
      %141 = arith.addf %138, %140 : vector<1x128xf32>
      %cst_70 = arith.constant 1.400000e+02 : f32
      %142 = vector.broadcast %cst_70 : f32 to vector<1x128xf32>
      %143 = arith.addf %141, %142 : vector<1x128xf32>
      %144 = arith.subf %143, %134 : vector<1x128xf32>
      %145 = arith.addf %144, %129 : vector<1x128xf32>
      %cst_71 = arith.constant 2.000000e-01 : f32
      %146 = vector.broadcast %cst_71 : f32 to vector<1x128xf32>
      %147 = arith.mulf %146, %145 : vector<1x128xf32>
      %148 = arith.subf %147, %134 : vector<1x128xf32>
      %cst_72 = arith.constant 2.000000e-02 : f32
      %149 = vector.broadcast %cst_72 : f32 to vector<1x128xf32>
      %150 = arith.mulf %149, %148 : vector<1x128xf32>
      %151 = arith.addf %134, %150 : vector<1x128xf32>
      %c1_73 = arith.constant 1 : index
      %c0_74 = arith.constant 0 : index
      %c0_75 = arith.constant 0 : index
      %152 = vector.load %arg4[%c1_73, %c0_74, %c0_75] : memref<2x128x128xf32, #tpu.memory_space<vmem>>, vector<1x128x128xf32>
      %153 = vector.shape_cast %152 : vector<1x128x128xf32> to vector<128x128xf32>
      %cst_76 = arith.constant dense<0.000000e+00> : vector<1x128xf32>
      %154 = tpu.matmul %123, %153, %cst_76 {dimension_numbers = #tpu.dot_dimension_numbers<[1], [0], [0], [1], [0, 0, 1, 1], [], []>} : vector<1x128xf32>, vector<128x128xf32>, vector<1x128xf32> -> vector<1x128xf32>
      %cst_77 = arith.constant 3.000000e+01 : f32
      %155 = vector.broadcast %cst_77 : f32 to vector<1x128xf32>
      %156 = arith.cmpf oge, %145, %155 : vector<1x128xf32>
      %157 = arith.extui %156 : vector<1x128xi1> to vector<1x128xi32>
      %158 = arith.sitofp %157 : vector<1x128xi32> to vector<1x128xf32>
      %c0_78 = arith.constant 0 : index
      %c0_79 = arith.constant 0 : index
      %c0_80 = arith.constant 0 : index
      %159 = vector.load %arg4[%c0_78, %c0_79, %c0_80] : memref<2x128x128xf32, #tpu.memory_space<vmem>>, vector<1x128x128xf32>
      %160 = vector.shape_cast %159 : vector<1x128x128xf32> to vector<128x128xf32>
      %cst_81 = arith.constant dense<0.000000e+00> : vector<1x128xf32>
      %161 = tpu.matmul %158, %160, %cst_81 {dimension_numbers = #tpu.dot_dimension_numbers<[1], [0], [0], [1], [0, 0, 1, 1], [], []>} : vector<1x128xf32>, vector<128x128xf32>, vector<1x128xf32> -> vector<1x128xf32>
      %162 = vector.extract_strided_slice %14 {offsets = [4, 0], sizes = [1, 128], strides = [1, 1]} : vector<8x128xf32> to vector<1x128xf32>
      %163 = arith.addf %162, %161 : vector<1x128xf32>
      %164 = arith.addf %163, %154 : vector<1x128xf32>
      %cst_82 = arith.constant -6.500000e+01 : f32
      %165 = vector.broadcast %cst_82 : f32 to vector<1x128xf32>
      %166 = arith.select %156, %165, %145 : vector<1x128xi1>, vector<1x128xf32>
      %cst_83 = arith.constant 8.000000e+00 : f32
      %167 = vector.broadcast %cst_83 : f32 to vector<1x128xf32>
      %168 = arith.addf %151, %167 : vector<1x128xf32>
      %169 = arith.select %156, %168, %151 : vector<1x128xi1>, vector<1x128xf32>
      %cst_84 = arith.constant 4.000000e-02 : f32
      %170 = vector.broadcast %cst_84 : f32 to vector<1x128xf32>
      %171 = arith.mulf %170, %166 : vector<1x128xf32>
      %172 = arith.mulf %171, %166 : vector<1x128xf32>
      %173 = arith.addf %166, %172 : vector<1x128xf32>
      %cst_85 = arith.constant 5.000000e+00 : f32
      %174 = vector.broadcast %cst_85 : f32 to vector<1x128xf32>
      %175 = arith.mulf %174, %166 : vector<1x128xf32>
      %176 = arith.addf %173, %175 : vector<1x128xf32>
      %cst_86 = arith.constant 1.400000e+02 : f32
      %177 = vector.broadcast %cst_86 : f32 to vector<1x128xf32>
      %178 = arith.addf %176, %177 : vector<1x128xf32>
      %179 = arith.subf %178, %169 : vector<1x128xf32>
      %180 = arith.addf %179, %164 : vector<1x128xf32>
      %cst_87 = arith.constant 2.000000e-01 : f32
      %181 = vector.broadcast %cst_87 : f32 to vector<1x128xf32>
      %182 = arith.mulf %181, %180 : vector<1x128xf32>
      %183 = arith.subf %182, %169 : vector<1x128xf32>
      %cst_88 = arith.constant 2.000000e-02 : f32
      %184 = vector.broadcast %cst_88 : f32 to vector<1x128xf32>
      %185 = arith.mulf %184, %183 : vector<1x128xf32>
      %186 = arith.addf %169, %185 : vector<1x128xf32>
      %c1_89 = arith.constant 1 : index
      %c0_90 = arith.constant 0 : index
      %c0_91 = arith.constant 0 : index
      %187 = vector.load %arg4[%c1_89, %c0_90, %c0_91] : memref<2x128x128xf32, #tpu.memory_space<vmem>>, vector<1x128x128xf32>
      %188 = vector.shape_cast %187 : vector<1x128x128xf32> to vector<128x128xf32>
      %cst_92 = arith.constant dense<0.000000e+00> : vector<1x128xf32>
      %189 = tpu.matmul %158, %188, %cst_92 {dimension_numbers = #tpu.dot_dimension_numbers<[1], [0], [0], [1], [0, 0, 1, 1], [], []>} : vector<1x128xf32>, vector<128x128xf32>, vector<1x128xf32> -> vector<1x128xf32>
      %cst_93 = arith.constant 3.000000e+01 : f32
      %190 = vector.broadcast %cst_93 : f32 to vector<1x128xf32>
      %191 = arith.cmpf oge, %180, %190 : vector<1x128xf32>
      %192 = arith.extui %191 : vector<1x128xi1> to vector<1x128xi32>
      %193 = arith.sitofp %192 : vector<1x128xi32> to vector<1x128xf32>
      %c0_94 = arith.constant 0 : index
      %c0_95 = arith.constant 0 : index
      %c0_96 = arith.constant 0 : index
      %194 = vector.load %arg4[%c0_94, %c0_95, %c0_96] : memref<2x128x128xf32, #tpu.memory_space<vmem>>, vector<1x128x128xf32>
      %195 = vector.shape_cast %194 : vector<1x128x128xf32> to vector<128x128xf32>
      %cst_97 = arith.constant dense<0.000000e+00> : vector<1x128xf32>
      %196 = tpu.matmul %193, %195, %cst_97 {dimension_numbers = #tpu.dot_dimension_numbers<[1], [0], [0], [1], [0, 0, 1, 1], [], []>} : vector<1x128xf32>, vector<128x128xf32>, vector<1x128xf32> -> vector<1x128xf32>
      %197 = vector.extract_strided_slice %14 {offsets = [5, 0], sizes = [1, 128], strides = [1, 1]} : vector<8x128xf32> to vector<1x128xf32>
      %198 = arith.addf %197, %196 : vector<1x128xf32>
      %199 = arith.addf %198, %189 : vector<1x128xf32>
      %cst_98 = arith.constant -6.500000e+01 : f32
      %200 = vector.broadcast %cst_98 : f32 to vector<1x128xf32>
      %201 = arith.select %191, %200, %180 : vector<1x128xi1>, vector<1x128xf32>
      %cst_99 = arith.constant 8.000000e+00 : f32
      %202 = vector.broadcast %cst_99 : f32 to vector<1x128xf32>
      %203 = arith.addf %186, %202 : vector<1x128xf32>
      %204 = arith.select %191, %203, %186 : vector<1x128xi1>, vector<1x128xf32>
      %cst_100 = arith.constant 4.000000e-02 : f32
      %205 = vector.broadcast %cst_100 : f32 to vector<1x128xf32>
      %206 = arith.mulf %205, %201 : vector<1x128xf32>
      %207 = arith.mulf %206, %201 : vector<1x128xf32>
      %208 = arith.addf %201, %207 : vector<1x128xf32>
      %cst_101 = arith.constant 5.000000e+00 : f32
      %209 = vector.broadcast %cst_101 : f32 to vector<1x128xf32>
      %210 = arith.mulf %209, %201 : vector<1x128xf32>
      %211 = arith.addf %208, %210 : vector<1x128xf32>
      %cst_102 = arith.constant 1.400000e+02 : f32
      %212 = vector.broadcast %cst_102 : f32 to vector<1x128xf32>
      %213 = arith.addf %211, %212 : vector<1x128xf32>
      %214 = arith.subf %213, %204 : vector<1x128xf32>
      %215 = arith.addf %214, %199 : vector<1x128xf32>
      %cst_103 = arith.constant 2.000000e-01 : f32
      %216 = vector.broadcast %cst_103 : f32 to vector<1x128xf32>
      %217 = arith.mulf %216, %215 : vector<1x128xf32>
      %218 = arith.subf %217, %204 : vector<1x128xf32>
      %cst_104 = arith.constant 2.000000e-02 : f32
      %219 = vector.broadcast %cst_104 : f32 to vector<1x128xf32>
      %220 = arith.mulf %219, %218 : vector<1x128xf32>
      %221 = arith.addf %204, %220 : vector<1x128xf32>
      %c1_105 = arith.constant 1 : index
      %c0_106 = arith.constant 0 : index
      %c0_107 = arith.constant 0 : index
      %222 = vector.load %arg4[%c1_105, %c0_106, %c0_107] : memref<2x128x128xf32, #tpu.memory_space<vmem>>, vector<1x128x128xf32>
      %223 = vector.shape_cast %222 : vector<1x128x128xf32> to vector<128x128xf32>
      %cst_108 = arith.constant dense<0.000000e+00> : vector<1x128xf32>
      %224 = tpu.matmul %193, %223, %cst_108 {dimension_numbers = #tpu.dot_dimension_numbers<[1], [0], [0], [1], [0, 0, 1, 1], [], []>} : vector<1x128xf32>, vector<128x128xf32>, vector<1x128xf32> -> vector<1x128xf32>
      %cst_109 = arith.constant 3.000000e+01 : f32
      %225 = vector.broadcast %cst_109 : f32 to vector<1x128xf32>
      %226 = arith.cmpf oge, %215, %225 : vector<1x128xf32>
      %227 = arith.extui %226 : vector<1x128xi1> to vector<1x128xi32>
      %228 = arith.sitofp %227 : vector<1x128xi32> to vector<1x128xf32>
      %c0_110 = arith.constant 0 : index
      %c0_111 = arith.constant 0 : index
      %c0_112 = arith.constant 0 : index
      %229 = vector.load %arg4[%c0_110, %c0_111, %c0_112] : memref<2x128x128xf32, #tpu.memory_space<vmem>>, vector<1x128x128xf32>
      %230 = vector.shape_cast %229 : vector<1x128x128xf32> to vector<128x128xf32>
      %cst_113 = arith.constant dense<0.000000e+00> : vector<1x128xf32>
      %231 = tpu.matmul %228, %230, %cst_113 {dimension_numbers = #tpu.dot_dimension_numbers<[1], [0], [0], [1], [0, 0, 1, 1], [], []>} : vector<1x128xf32>, vector<128x128xf32>, vector<1x128xf32> -> vector<1x128xf32>
      %232 = vector.extract_strided_slice %14 {offsets = [6, 0], sizes = [1, 128], strides = [1, 1]} : vector<8x128xf32> to vector<1x128xf32>
      %233 = arith.addf %232, %231 : vector<1x128xf32>
      %234 = arith.addf %233, %224 : vector<1x128xf32>
      %cst_114 = arith.constant -6.500000e+01 : f32
      %235 = vector.broadcast %cst_114 : f32 to vector<1x128xf32>
      %236 = arith.select %226, %235, %215 : vector<1x128xi1>, vector<1x128xf32>
      %cst_115 = arith.constant 8.000000e+00 : f32
      %237 = vector.broadcast %cst_115 : f32 to vector<1x128xf32>
      %238 = arith.addf %221, %237 : vector<1x128xf32>
      %239 = arith.select %226, %238, %221 : vector<1x128xi1>, vector<1x128xf32>
      %cst_116 = arith.constant 4.000000e-02 : f32
      %240 = vector.broadcast %cst_116 : f32 to vector<1x128xf32>
      %241 = arith.mulf %240, %236 : vector<1x128xf32>
      %242 = arith.mulf %241, %236 : vector<1x128xf32>
      %243 = arith.addf %236, %242 : vector<1x128xf32>
      %cst_117 = arith.constant 5.000000e+00 : f32
      %244 = vector.broadcast %cst_117 : f32 to vector<1x128xf32>
      %245 = arith.mulf %244, %236 : vector<1x128xf32>
      %246 = arith.addf %243, %245 : vector<1x128xf32>
      %cst_118 = arith.constant 1.400000e+02 : f32
      %247 = vector.broadcast %cst_118 : f32 to vector<1x128xf32>
      %248 = arith.addf %246, %247 : vector<1x128xf32>
      %249 = arith.subf %248, %239 : vector<1x128xf32>
      %250 = arith.addf %249, %234 : vector<1x128xf32>
      %cst_119 = arith.constant 2.000000e-01 : f32
      %251 = vector.broadcast %cst_119 : f32 to vector<1x128xf32>
      %252 = arith.mulf %251, %250 : vector<1x128xf32>
      %253 = arith.subf %252, %239 : vector<1x128xf32>
      %cst_120 = arith.constant 2.000000e-02 : f32
      %254 = vector.broadcast %cst_120 : f32 to vector<1x128xf32>
      %255 = arith.mulf %254, %253 : vector<1x128xf32>
      %256 = arith.addf %239, %255 : vector<1x128xf32>
      %c1_121 = arith.constant 1 : index
      %c0_122 = arith.constant 0 : index
      %c0_123 = arith.constant 0 : index
      %257 = vector.load %arg4[%c1_121, %c0_122, %c0_123] : memref<2x128x128xf32, #tpu.memory_space<vmem>>, vector<1x128x128xf32>
      %258 = vector.shape_cast %257 : vector<1x128x128xf32> to vector<128x128xf32>
      %cst_124 = arith.constant dense<0.000000e+00> : vector<1x128xf32>
      %259 = tpu.matmul %228, %258, %cst_124 {dimension_numbers = #tpu.dot_dimension_numbers<[1], [0], [0], [1], [0, 0, 1, 1], [], []>} : vector<1x128xf32>, vector<128x128xf32>, vector<1x128xf32> -> vector<1x128xf32>
      %cst_125 = arith.constant 3.000000e+01 : f32
      %260 = vector.broadcast %cst_125 : f32 to vector<1x128xf32>
      %261 = arith.cmpf oge, %250, %260 : vector<1x128xf32>
      %262 = arith.extui %261 : vector<1x128xi1> to vector<1x128xi32>
      %263 = arith.sitofp %262 : vector<1x128xi32> to vector<1x128xf32>
      %c0_126 = arith.constant 0 : index
      %c0_127 = arith.constant 0 : index
      %c0_128 = arith.constant 0 : index
      %264 = vector.load %arg4[%c0_126, %c0_127, %c0_128] : memref<2x128x128xf32, #tpu.memory_space<vmem>>, vector<1x128x128xf32>
      %265 = vector.shape_cast %264 : vector<1x128x128xf32> to vector<128x128xf32>
      %cst_129 = arith.constant dense<0.000000e+00> : vector<1x128xf32>
      %266 = tpu.matmul %263, %265, %cst_129 {dimension_numbers = #tpu.dot_dimension_numbers<[1], [0], [0], [1], [0, 0, 1, 1], [], []>} : vector<1x128xf32>, vector<128x128xf32>, vector<1x128xf32> -> vector<1x128xf32>
      %267 = vector.extract_strided_slice %14 {offsets = [7, 0], sizes = [1, 128], strides = [1, 1]} : vector<8x128xf32> to vector<1x128xf32>
      %268 = arith.addf %267, %266 : vector<1x128xf32>
      %269 = arith.addf %268, %259 : vector<1x128xf32>
      %cst_130 = arith.constant -6.500000e+01 : f32
      %270 = vector.broadcast %cst_130 : f32 to vector<1x128xf32>
      %271 = arith.select %261, %270, %250 : vector<1x128xi1>, vector<1x128xf32>
      %cst_131 = arith.constant 8.000000e+00 : f32
      %272 = vector.broadcast %cst_131 : f32 to vector<1x128xf32>
      %273 = arith.addf %256, %272 : vector<1x128xf32>
      %274 = arith.select %261, %273, %256 : vector<1x128xi1>, vector<1x128xf32>
      %cst_132 = arith.constant 4.000000e-02 : f32
      %275 = vector.broadcast %cst_132 : f32 to vector<1x128xf32>
      %276 = arith.mulf %275, %271 : vector<1x128xf32>
      %277 = arith.mulf %276, %271 : vector<1x128xf32>
      %278 = arith.addf %271, %277 : vector<1x128xf32>
      %cst_133 = arith.constant 5.000000e+00 : f32
      %279 = vector.broadcast %cst_133 : f32 to vector<1x128xf32>
      %280 = arith.mulf %279, %271 : vector<1x128xf32>
      %281 = arith.addf %278, %280 : vector<1x128xf32>
      %cst_134 = arith.constant 1.400000e+02 : f32
      %282 = vector.broadcast %cst_134 : f32 to vector<1x128xf32>
      %283 = arith.addf %281, %282 : vector<1x128xf32>
      %284 = arith.subf %283, %274 : vector<1x128xf32>
      %285 = arith.addf %284, %269 : vector<1x128xf32>
      %cst_135 = arith.constant 2.000000e-01 : f32
      %286 = vector.broadcast %cst_135 : f32 to vector<1x128xf32>
      %287 = arith.mulf %286, %285 : vector<1x128xf32>
      %288 = arith.subf %287, %274 : vector<1x128xf32>
      %cst_136 = arith.constant 2.000000e-02 : f32
      %289 = vector.broadcast %cst_136 : f32 to vector<1x128xf32>
      %290 = arith.mulf %289, %288 : vector<1x128xf32>
      %291 = arith.addf %274, %290 : vector<1x128xf32>
      %c1_137 = arith.constant 1 : index
      %c0_138 = arith.constant 0 : index
      %c0_139 = arith.constant 0 : index
      %292 = vector.load %arg4[%c1_137, %c0_138, %c0_139] : memref<2x128x128xf32, #tpu.memory_space<vmem>>, vector<1x128x128xf32>
      %293 = vector.shape_cast %292 : vector<1x128x128xf32> to vector<128x128xf32>
      %cst_140 = arith.constant dense<0.000000e+00> : vector<1x128xf32>
      %294 = tpu.matmul %263, %293, %cst_140 {dimension_numbers = #tpu.dot_dimension_numbers<[1], [0], [0], [1], [0, 0, 1, 1], [], []>} : vector<1x128xf32>, vector<128x128xf32>, vector<1x128xf32> -> vector<1x128xf32>
      %295 = tpu.concatenate %40, %75, %110, %145, %180, %215, %250, %285 in 0 : vector<1x128xf32>, vector<1x128xf32>, vector<1x128xf32>, vector<1x128xf32>, vector<1x128xf32>, vector<1x128xf32>, vector<1x128xf32>, vector<1x128xf32> -> vector<8x128xf32>
      %296 = arith.index_cast %12 : i32 to index
      %c0_141 = arith.constant 0 : index
      %297 = vector.load %arg3[%296, %c0_141] : memref<32x128xf32, #tpu.memory_space<vmem>>, vector<8x128xf32>
      tpu.vector_store %arg3[%296, %c0_141], %295 {strides = array<i32>} : memref<32x128xf32, #tpu.memory_space<vmem>>, vector<8x128xf32>,
      scf.yield %285, %291, %294 : vector<1x128xf32>, vector<1x128xf32>, vector<1x128xf32>
    }
    %c4_i32_7 = arith.constant 4 : i32
    %c0_8 = arith.constant 0 : index
    %c0_9 = arith.constant 0 : index
    %8 = vector.load %arg5[%c0_8, %c0_9] : memref<1x128xf32, #tpu.memory_space<vmem>>, vector<1x128xf32>
    tpu.vector_store %arg5[%c0_8, %c0_9], %7#0 {strides = array<i32>} : memref<1x128xf32, #tpu.memory_space<vmem>>, vector<1x128xf32>,
    %c0_10 = arith.constant 0 : index
    %c0_11 = arith.constant 0 : index
    %9 = vector.load %arg6[%c0_10, %c0_11] : memref<1x128xf32, #tpu.memory_space<vmem>>, vector<1x128xf32>
    tpu.vector_store %arg6[%c0_10, %c0_11], %7#1 {strides = array<i32>} : memref<1x128xf32, #tpu.memory_space<vmem>>, vector<1x128xf32>,
    %c0_12 = arith.constant 0 : index
    %c0_13 = arith.constant 0 : index
    %10 = vector.load %arg7[%c0_12, %c0_13] : memref<1x128xf32, #tpu.memory_space<vmem>>, vector<1x128xf32>
    tpu.vector_store %arg7[%c0_12, %c0_13], %7#2 {strides = array<i32>} : memref<1x128xf32, #tpu.memory_space<vmem>>, vector<1x128xf32>,
    return
  }
  func.func @transform_0(%arg0: i32) -> (i32, i32) {
    %c0_i32 = arith.constant 0 : i32
    %c0_i32_0 = arith.constant 0 : i32
    return %arg0, %c0_i32 : i32, i32
  }
  func.func @transform_2(%arg0: i32) -> (i32, i32) {
    %c0_i32 = arith.constant 0 : i32
    %c0_i32_0 = arith.constant 0 : i32
    return %arg0, %c0_i32 : i32, i32
  }
}

</mosaic_0001>

<bundles_post_ra>
// kernel: tpu_custom_call.1
= control target key start
LH: loop header
LB: loop body
LE: loop exit
PB: predicated region body
PF: predicated region fallthrough
CT: control target
= control target key end

     0   :  { %7 = vsyncpa [#allocation8], 0  ;;  %s1546_s0 = inlined_call_operand.hbm [shape: f32[32,128], index: 0, kind: input, shape index: {}]   ;;  %s1547_s1 = inlined_call_operand.hbm [shape: f32[128,128], index: 1, kind: input, shape index: {}]   ;;  %s1548_s2 = inlined_call_operand.hbm [shape: f32[32,128], index: 2, kind: output, shape index: {}]  }
   0x1   :  { %8 = vsyncpa [#allocation9], 0  ;;  %s13_s11 = sshll.u32 %s1546_s0, 4  ;;  %s1030_s12 = smov [#allocation7]   ;;  %s14_s11 = int_to_ptr.hbm [resolvable:$true] %s13_s11 }
   0x2   :  { %s15_s13 = sshll.u32 %s1030_s12, 4  ;;  %s1031_s14 = smov 128   ;;  %s16_s13 = int_to_ptr.vmem [resolvable:$true] %s15_s13 }
   0x3   :  { %s1032_s15 = smov 8  }
   0x4   :  { %21 = dma.hbm_to_vmem [thread:$0]  %s14_s11, 512, %s16_s13, [#allocation8], %s1031_s14, %s1031_s14, %s1032_s15  }
   0x5   :  { %1008 = dma.done.wait [#allocation8], 512  }
   0x6   :  { %1009 = vsyncadd [#allocation8], 4294966784  ;;  %s38_s18 = sshll.u32 %s1547_s1, 4  ;;  %s1033_s19 = smov [#allocation2 + $0x80]   ;;  %s39_s18 = int_to_ptr.hbm [resolvable:$true] %s38_s18 }
   0x7   :  { %s40_s20 = sshll.u32 %s1033_s19, 4  ;;  %s41_s20 = int_to_ptr.vmem [resolvable:$true] %s40_s20 }
   0x8   :  { %43 = dma.hbm_to_vmem [thread:$0]  %s39_s18, 2048, %s41_s20, [#allocation6] }
   0x9   :  { %1010 = dma.done.wait [#allocation6], 2048 }
   0xa   :  { %1011 = vsyncadd [#allocation6], 4294965248  ;;  %v63_v0 = vlaneseq  ;;  %v1034_v1 = vmov -65.0   ;;  %v1035_v2 = vmov -13.0   ;;  %v1036_v5 = vmov 0.0   ;;  %v47_v11 = vld [vmem:[#allocation2 + $0x80] sm:$0xff] }
   0xb   :  { %162 = vst [vmem:[#allocation3] sm:$0x1] %v1034_v1  ;;  %v48_v12 = vld [vmem:[#allocation2 + $0x88] sm:$0xff]  ;;  %v49_v13 = vld [vmem:[#allocation2 + $0x90] sm:$0xff]  ;;  %v50_v19 = vld [vmem:[#allocation2 + $0x98] sm:$0xff]  ;;  %s1116_s0 = smov 0  }
   0xc   :  { %163 = vst [vmem:[#allocation4] sm:$0x1] %v1035_v2  ;;  %v1063_v3 = vshrl.u32 %v63_v0, 7  ;;  %v1065_v4 = vand.u32 127, %v63_v0  ;;  %v51_v24 = vld [vmem:[#allocation2 + $0xa0] sm:$0xff]  ;;  %v52_v27 = vld [vmem:[#allocation2 + $0xa8] sm:$0xff] }
   0xd   :  { %164 = vst [vmem:[#allocation5] sm:$0x1] %v1036_v5  ;;  %v53_v31 = vld [vmem:[#allocation2 + $0xb0] sm:$0xff]  ;;  %v54_v35 = vld [vmem:[#allocation2 + $0xb8] sm:$0xff]  ;;  %v55_v39 = vld [vmem:[#allocation2 + $0xc0] sm:$0xff] }
   0xe   :  { %v65_v6 = vadd.s32 8, %v1063_v3  ;;  %v66_v7 = vadd.s32 16, %v1063_v3  ;;  %v67_v8 = vadd.s32 24, %v1063_v3  ;;  %vm82_vm0 = vcmp.lt.s32.totalorder %v1063_v3, %v1065_v4  ;;  %v56_v43 = vld [vmem:[#allocation2 + $0xc8] sm:$0xff]  ;;  %v57_v47 = vld [vmem:[#allocation2 + $0xd0] sm:$0xff]  ;;  %v58_v51 = vld [vmem:[#allocation2 + $0xd8] sm:$0xff] }
   0xf   :  { %v68_v9 = vadd.s32 32, %v1063_v3  ;;  %v69_v10 = vadd.s32 40, %v1063_v3  ;;  %v70_v14 = vadd.s32 48, %v1063_v3  ;;  %v98_v16 = vsel %vm82_vm0, %v47_v11, 0.0  ;;  %v59_v55 = vld [vmem:[#allocation2 + $0xe0] sm:$0xff]  ;;  %v60_v59 = vld [vmem:[#allocation2 + $0xe8] sm:$0xff] }
  0x10   :  { %vm83_vm1 = vcmp.lt.s32.totalorder %v65_v6, %v1065_v4  ;;  %vm84_vm2 = vcmp.lt.s32.totalorder %v66_v7, %v1065_v4  ;;  %vm85_vm3 = vcmp.lt.s32.totalorder %v67_v8, %v1065_v4  ;;  %114 = vst [vmem:[#allocation2] sm:$0xff] %v98_v16  ;;  %v130_v21 = vsub.f32 %v47_v11, %v98_v16  ;;  %v61_v63 = vld [vmem:[#allocation2 + $0xf0] sm:$0xff]  ;;  %v62_v2 = vld [vmem:[#allocation2 + $0xf8] sm:$0xff] }
  0x11   :  { %v99_v17 = vsel %vm83_vm1, %v48_v12, 0.0  ;;  %v100_v18 = vsel %vm84_vm2, %v49_v13, 0.0  ;;  %vm86_vm4 = vcmp.lt.s32.totalorder %v68_v9, %v1065_v4  ;;  %v101_v23 = vsel %vm85_vm3, %v50_v19, 0.0 }
  0x12   :  { %v1078_v15 = vld [vmem:[#allocation3] sm:$0x1]   ;;  %v131_v22 = vsub.f32 %v48_v12, %v99_v17  ;;  %115 = vst [vmem:[#allocation2 + $0x8] sm:$0xff] %v99_v17  ;;  %v132_v26 = vsub.f32 %v49_v13, %v100_v18  ;;  %vm87_vm5 = vcmp.lt.s32.totalorder %v69_v10, %v1065_v4  ;;  %v71_v28 = vadd.s32 56, %v1063_v3 }
  0x13   :  { %v1081_v20 = vld [vmem:[#allocation4] sm:$0x1]   ;;  %146 = vst [vmem:[#allocation2 + $0x80] sm:$0xff] %v130_v21  ;;  %v102_v29 = vsel %vm86_vm4, %v51_v24, 0.0  ;;  %v133_v30 = vsub.f32 %v50_v19, %v101_v23  ;;  %vm88_vm6 = vcmp.lt.s32.totalorder %v70_v14, %v1065_v4  ;;  %v72_v32 = vadd.s32 64, %v1063_v3 }
  0x14   :  { %v1085_v25 = vld [vmem:[#allocation5] sm:$0x1]   ;;  %147 = vst [vmem:[#allocation2 + $0x88] sm:$0xff] %v131_v22  ;;  %v103_v33 = vsel %vm87_vm5, %v52_v27, 0.0  ;;  %v134_v34 = vsub.f32 %v51_v24, %v102_v29  ;;  %vm89_vm7 = vcmp.lt.s32.totalorder %v71_v28, %v1065_v4  ;;  %v73_v36 = vadd.s32 72, %v1063_v3 }
  0x15   :  { %116 = vst [vmem:[#allocation2 + $0x10] sm:$0xff] %v100_v18  ;;  %v104_v37 = vsel %vm88_vm6, %v53_v31, 0.0  ;;  %v135_v38 = vsub.f32 %v52_v27, %v103_v33  ;;  %vm90_vm8 = vcmp.lt.s32.totalorder %v72_v32, %v1065_v4  ;;  %v74_v40 = vadd.s32 80, %v1063_v3 }
  0x16   :  { %148 = vst [vmem:[#allocation2 + $0x90] sm:$0xff] %v132_v26  ;;  %v105_v41 = vsel %vm89_vm7, %v54_v35, 0.0  ;;  %v136_v42 = vsub.f32 %v53_v31, %v104_v37  ;;  %vm91_vm9 = vcmp.lt.s32.totalorder %v73_v36, %v1065_v4  ;;  %v75_v44 = vadd.s32 88, %v1063_v3 }
  0x17   :  { %117 = vst [vmem:[#allocation2 + $0x18] sm:$0xff] %v101_v23  ;;  %v106_v45 = vsel %vm90_vm8, %v55_v39, 0.0  ;;  %v137_v46 = vsub.f32 %v54_v35, %v105_v41  ;;  %vm92_vm10 = vcmp.lt.s32.totalorder %v74_v40, %v1065_v4  ;;  %v76_v48 = vadd.s32 96, %v1063_v3 }
  0x18   :  { %149 = vst [vmem:[#allocation2 + $0x98] sm:$0xff] %v133_v30  ;;  %v107_v49 = vsel %vm91_vm9, %v56_v43, 0.0  ;;  %v138_v50 = vsub.f32 %v55_v39, %v106_v45  ;;  %vm93_vm11 = vcmp.lt.s32.totalorder %v75_v44, %v1065_v4  ;;  %v77_v52 = vadd.s32 104, %v1063_v3 }
  0x19   :  { %118 = vst [vmem:[#allocation2 + $0x20] sm:$0xff] %v102_v29  ;;  %v108_v53 = vsel %vm92_vm10, %v57_v47, 0.0  ;;  %v139_v54 = vsub.f32 %v56_v43, %v107_v49  ;;  %vm94_vm12 = vcmp.lt.s32.totalorder %v76_v48, %v1065_v4  ;;  %v78_v56 = vadd.s32 112, %v1063_v3 }
  0x1a   :  { %150 = vst [vmem:[#allocation2 + $0xa0] sm:$0xff] %v134_v34  ;;  %v109_v57 = vsel %vm93_vm11, %v58_v51, 0.0  ;;  %v140_v58 = vsub.f32 %v57_v47, %v108_v53  ;;  %vm95_vm13 = vcmp.lt.s32.totalorder %v77_v52, %v1065_v4  ;;  %v79_v60 = vadd.s32 120, %v1063_v3 }
  0x1b   :  { %119 = vst [vmem:[#allocation2 + $0x28] sm:$0xff] %v103_v33  ;;  %v110_v61 = vsel %vm94_vm12, %v59_v55, 0.0  ;;  %v141_v62 = vsub.f32 %v58_v51, %v109_v57  ;;  %vm96_vm14 = vcmp.lt.s32.totalorder %v78_v56, %v1065_v4  ;;  %v111_v0 = vsel %vm95_vm13, %v60_v59, 0.0 }
  0x1c   :  { %151 = vst [vmem:[#allocation2 + $0xa8] sm:$0xff] %v135_v38  ;;  %v142_v1 = vsub.f32 %v59_v55, %v110_v61  ;;  %vm97_vm15 = vcmp.lt.s32.totalorder %v79_v60, %v1065_v4  ;;  %v112_v5 = vsel %vm96_vm14, %v61_v63, 0.0  ;;  %v143_v6 = vsub.f32 %v60_v59, %v111_v0 }
  0x1d   :  { %120 = vst [vmem:[#allocation2 + $0x30] sm:$0xff] %v104_v37  ;;  %v113_v3 = vsel %vm97_vm15, %v62_v2, 0.0  ;;  %v144_v7 = vsub.f32 %v61_v63, %v112_v5 }
  0x1e   :  { %152 = vst [vmem:[#allocation2 + $0xb0] sm:$0xff] %v136_v42  ;;  %v145_v8 = vsub.f32 %v62_v2, %v113_v3 }
  0x1f   :  { %121 = vst [vmem:[#allocation2 + $0x38] sm:$0xff] %v105_v41 }
  0x20   :  { %153 = vst [vmem:[#allocation2 + $0xb8] sm:$0xff] %v137_v46 }
  0x21   :  { %122 = vst [vmem:[#allocation2 + $0x40] sm:$0xff] %v106_v45 }
  0x22   :  { %154 = vst [vmem:[#allocation2 + $0xc0] sm:$0xff] %v138_v50 }
  0x23   :  { %123 = vst [vmem:[#allocation2 + $0x48] sm:$0xff] %v107_v49 }
  0x24   :  { %155 = vst [vmem:[#allocation2 + $0xc8] sm:$0xff] %v139_v54 }
  0x25   :  { %124 = vst [vmem:[#allocation2 + $0x50] sm:$0xff] %v108_v53 }
  0x26   :  { %156 = vst [vmem:[#allocation2 + $0xd0] sm:$0xff] %v140_v58 }
  0x27   :  { %125 = vst [vmem:[#allocation2 + $0x58] sm:$0xff] %v109_v57 }
  0x28   :  { %157 = vst [vmem:[#allocation2 + $0xd8] sm:$0xff] %v141_v62 }
  0x29   :  { %126 = vst [vmem:[#allocation2 + $0x60] sm:$0xff] %v110_v61 }
  0x2a   :  { %158 = vst [vmem:[#allocation2 + $0xe0] sm:$0xff] %v142_v1 }
  0x2b   :  { %127 = vst [vmem:[#allocation2 + $0x68] sm:$0xff] %v111_v0 }
  0x2c   :  { %159 = vst [vmem:[#allocation2 + $0xe8] sm:$0xff] %v143_v6 }
  0x2d   :  { %128 = vst [vmem:[#allocation2 + $0x70] sm:$0xff] %v112_v5 }
  0x2e   :  { %160 = vst [vmem:[#allocation2 + $0xf0] sm:$0xff] %v144_v7 }
  0x2f   :  { %129 = vst [vmem:[#allocation2 + $0x78] sm:$0xff] %v113_v3 }
  0x30   :  { %161 = vst [vmem:[#allocation2 + $0xf8] sm:$0xff] %v145_v8 }
  0x31 LB: > { %v1140_v11 = vld [vmem:[#allocation2 + $0x60] sm:$0xff]  ;;  %v1148_v14 = vld [vmem:[#allocation2 + $0x58] sm:$0xff]  ;;  %v1156_v17 = vld [vmem:[#allocation2 + $0x50] sm:$0xff]  ;;  %vm180_vm0 = vcmp.ge.f32.partialorder %v1024_v15, 30.0  ;;  %v1037_v39 = vmov 1.0   ;;  %s853_s1 = sshll.u32 %s1028_s0, 3  ;;  %s1028_s0 = sphi %s1116_s0, %s173_s0   ;;  %v1024_v15 = vphi %v1078_v15, %v1551_v15   ;;  %v1020_v20 = vphi %v1081_v20, %v1550_v20   ;;  %v1016_v25 = vphi %v1085_v25, %v1549_v25  }
  0x32   : > { %v1136_v10 = vld [vmem:[#allocation2 + $0x68] sm:$0xff]  ;;  %v1161_v18 = vld [vmem:[#allocation2 + $0xe0] sm:$0xff]  ;;  %v1169_v21 = vld [vmem:[#allocation2 + $0xd8] sm:$0xff]  ;;  %v221_v44 = vsel %vm180_vm0, -65.0, %v1024_v15  ;;  %v222_v50 = vadd.f32 8.0, %v1020_v20  ;;  %s178_s21 = scalar_lea.vmem [#allocation7], %s853_s1 }
  0x33   : > { %v1153_v16 = vld [vmem:[#allocation2 + $0xe8] sm:$0xff]  ;;  %v1172_v22 = vld [vmem:[#allocation2 + $0x40] sm:$0xff]  ;;  %v1177_v23 = vld [vmem:[#allocation2 + $0xd0] sm:$0xff]  ;;  %v224_v45 = vmul.f32 0.04, %v221_v44  ;;  %v227_v48 = vmul.f32 5.0, %v221_v44 }
  0x34   : > { %v1132_v9 = vld [vmem:[#allocation2 + $0x70] sm:$0xff]  ;;  %v1164_v19 = vld [vmem:[#allocation2 + $0x48] sm:$0xff]  ;;  %v1180_v24 = vld [vmem:[#allocation2 + $0x38] sm:$0xff]  ;;  %v223_v52 = vsel %vm180_vm0, %v222_v50, %v1020_v20  ;;  %vm791_vm3 = vcmask 1040384   ;;  %vm793_vm4 = vcmask 1041408   ;;  %vm795_vm6 = vcmask 1042432  }
  0x35   : > { %v1145_v13 = vld [vmem:[#allocation2 + $0xf0] sm:$0xff]  ;;  %v1185_v26 = vld [vmem:[#allocation2 + $0xc8] sm:$0xff]  ;;  %v1193_v28 = vld [vmem:[#allocation2 + $0xc0] sm:$0xff]  ;;  %v225_v46 = vmul.f32 %v224_v45, %v221_v44  ;;  %vm797_vm8 = vcmask 1043456   ;;  %vm799_vm10 = vcmask 1044480   ;;  %vm801_vm12 = vcmask 1045504  }
  0x36   : > { %v1130_v4 = vld [vmem:[#allocation2 + $0x78] sm:$0xff]  ;;  %v1188_v27 = vld [vmem:[#allocation2 + $0x30] sm:$0xff]  ;;  %v1196_v29 = vld [vmem:[#allocation2 + $0x28] sm:$0xff]  ;;  %vm803_vm14 = vcmask 1046528   ;;  %s805_s22 = scalar_lea.vmem [#allocation10], %s853_s1  ;;  %s173_s0 = sadd.s32 1, %s1028_s0  }
  0x37   : > { %199 = vmatpush.msra.mxu0 %v1130_v4  ;;  %276 = vmatpush.msra.mxu2 %v1130_v4  ;;  %v1143_v12 = vld [vmem:[#allocation2 + $0xf8] sm:$0xff]  ;;  %v1204_v31 = vld [vmem:[#allocation2 + $0x20] sm:$0xff]  ;;  %v1209_v32 = vld [vmem:[#allocation2 + $0xb0] sm:$0xff]  ;;  %v226_v47 = vadd.f32 %v225_v46, %v221_v44  ;;  %p170_p0 = scmp.ge.s32.totalorder %s173_s0, 4  }
  0x38   : > { %324 = vmatpush.msra.mxu3 %v1143_v12  ;;  %253 = vmatpush.msra.mxu1 %v1143_v12  ;;  %v1201_v30 = vld [vmem:[#allocation2 + $0xb8] sm:$0xff]  ;;  %v1217_v34 = vld [vmem:[#allocation2 + $0xa8] sm:$0xff]  ;;  %v1220_v35 = vld [vmem:[#allocation2 + $0x10] sm:$0xff]  ;;  %s816_s25 = sshll.u32 (%p170_p0), %s1548_s2, 4  ;;  %s1038_s26 = smov (%p170_p0), [#allocation10]   ;;  %s817_s25 = int_to_ptr.hbm [resolvable:$true] %s816_s25 }
  0x39   : > { %200 = vmatpush.msra.mxu0 %v1132_v9  ;;  %277 = vmatpush.msra.mxu2 %v1132_v9  ;;  %v1212_v33 = vld [vmem:[#allocation2 + $0x18] sm:$0xff]  ;;  %v1225_v36 = vld [vmem:[#allocation2 + $0xa0] sm:$0xff]  ;;  %v1228_v37 = vld [vmem:[#allocation2 + $0x8] sm:$0xff]  ;;  %v228_v49 = vadd.f32 %v227_v48, %v226_v47  ;;  %s814_s27 = sshll.u32 (%p170_p0), %s1038_s26, 4  ;;  %s815_s27 = int_to_ptr.vmem [resolvable:$true] %s814_s27 }
  0x3a   : > { %325 = vmatpush.msra.mxu3 %v1145_v13  ;;  %254 = vmatpush.msra.mxu1 %v1145_v13  ;;  %v1234_v38 = vld [vmem:[#allocation2] sm:$0xff]  ;;  %v1294_v40 = vld [vmem:[#allocation2 + $0x98] sm:$0xff]  ;;  %v1298_v41 = vld [vmem:[#allocation2 + $0x90] sm:$0xff] }
  0x3b   : > { %201 = vmatpush.msra.mxu0 %v1136_v10  ;;  %278 = vmatpush.msra.mxu2 %v1136_v10  ;;  %v1302_v42 = vld [vmem:[#allocation2 + $0x88] sm:$0xff]  ;;  %v1306_v43 = vld [vmem:[#allocation2 + $0x80] sm:$0xff]  ;;  %v229_v51 = vadd.f32 140.0, %v228_v49  ;;  %v1345_v53 = vld [vmem:[%s178_s21] sm:$0xff] }
  0x3c   : > { %326 = vmatpush.msra.mxu3 %v1153_v16  ;;  %255 = vmatpush.msra.mxu1 %v1153_v16 }
  0x3d   : > { %202 = vmatpush.msra.mxu0 %v1140_v11  ;;  %279 = vmatpush.msra.mxu2 %v1140_v11  ;;  %v230_v56 = vsub.f32 %v229_v51, %v223_v52 }
  0x3e   : > { %327 = vmatpush.msra.mxu3 %v1161_v18  ;;  %256 = vmatpush.msra.mxu1 %v1161_v18 }
  0x3f   : > { %203 = vmatpush.msra.mxu0 %v1148_v14  ;;  %280 = vmatpush.msra.mxu2 %v1148_v14 }
  0x40   : > { %328 = vmatpush.msra.mxu3 %v1169_v21  ;;  %257 = vmatpush.msra.mxu1 %v1169_v21 }
  0x41   : > { %204 = vmatpush.msra.mxu0 %v1156_v17  ;;  %281 = vmatpush.msra.mxu2 %v1156_v17 }
  0x42   : > { %329 = vmatpush.msra.mxu3 %v1177_v23  ;;  %258 = vmatpush.msra.mxu1 %v1177_v23 }
  0x43   : > { %205 = vmatpush.msra.mxu0 %v1164_v19  ;;  %282 = vmatpush.msra.mxu2 %v1164_v19 }
  0x44   : > { %330 = vmatpush.msra.mxu3 %v1185_v26  ;;  %259 = vmatpush.msra.mxu1 %v1185_v26 }
  0x45   : > { %206 = vmatpush.msra.mxu0 %v1172_v22  ;;  %283 = vmatpush.msra.mxu2 %v1172_v22 }
  0x46   : > { %331 = vmatpush.msra.mxu3 %v1193_v28  ;;  %260 = vmatpush.msra.mxu1 %v1193_v28 }
  0x47   : > { %207 = vmatpush.msra.mxu0 %v1180_v24  ;;  %284 = vmatpush.msra.mxu2 %v1180_v24 }
  0x48   : > { %332 = vmatpush.msra.mxu3 %v1201_v30  ;;  %261 = vmatpush.msra.mxu1 %v1201_v30 }
  0x49   : > { %208 = vmatpush.msra.mxu0 %v1188_v27  ;;  %285 = vmatpush.msra.mxu2 %v1188_v27 }
  0x4a   : > { %333 = vmatpush.msra.mxu3 %v1209_v32  ;;  %262 = vmatpush.msra.mxu1 %v1209_v32 }
  0x4b   : > { %209 = vmatpush.msra.mxu0 %v1196_v29  ;;  %286 = vmatpush.msra.mxu2 %v1196_v29 }
  0x4c   : > { %334 = vmatpush.msra.mxu3 %v1217_v34  ;;  %263 = vmatpush.msra.mxu1 %v1217_v34 }
  0x4d   : > { %210 = vmatpush.msra.mxu0 %v1204_v31  ;;  %287 = vmatpush.msra.mxu2 %v1204_v31 }
  0x4e   : > { %335 = vmatpush.msra.mxu3 %v1225_v36  ;;  %264 = vmatpush.msra.mxu1 %v1225_v36 }
  0x4f   : > { %211 = vmatpush.msra.mxu0 %v1212_v33  ;;  %288 = vmatpush.msra.mxu2 %v1212_v33 }
  0x50   : > { %336 = vmatpush.msra.mxu3 %v1294_v40  ;;  %265 = vmatpush.msra.mxu1 %v1294_v40 }
  0x51   : > { %212 = vmatpush.msra.mxu0 %v1220_v35  ;;  %289 = vmatpush.msra.mxu2 %v1220_v35 }
  0x52   : > { %337 = vmatpush.msra.mxu3 %v1298_v41  ;;  %266 = vmatpush.msra.mxu1 %v1298_v41 }
  0x53   : > { %213 = vmatpush.msra.mxu0 %v1228_v37  ;;  %290 = vmatpush.msra.mxu2 %v1228_v37 }
  0x54   : > { %338 = vmatpush.msra.mxu3 %v1302_v42  ;;  %267 = vmatpush.msra.mxu1 %v1302_v42 }
  0x55   : > { %214 = vmatpush.msra.mxu0 %v1234_v38  ;;  %291 = vmatpush.msra.mxu2 %v1234_v38 }
  0x56   : > { %855 = vmatmul.msk.f32.vlgmr.msra.gmra.mxu0 %vm180_vm0, %v1037_v39  ;;  %339 = vmatpush.msra.mxu3 %v1306_v43 }
  0x57   : > { %418 = vmatpush.msrb.mxu2 %v1130_v4  ;;  %347 = vmatpush.msrb.mxu0 %v1130_v4 }
  0x58   : > { %268 = vmatpush.msra.mxu1 %v1306_v43  ;;  %466 = vmatpush.msrb.mxu3 %v1143_v12 }
  0x59   : > { %419 = vmatpush.msrb.mxu2 %v1132_v9  ;;  %348 = vmatpush.msrb.mxu0 %v1132_v9 }
  0x5a   : > { %856 = vmatmul.msk.f32.vlgmr.msra.gmra.mxu1 %vm180_vm0, %v1037_v39  ;;  %467 = vmatpush.msrb.mxu3 %v1145_v13 }
  0x5b   : > { %420 = vmatpush.msrb.mxu2 %v1136_v10  ;;  %349 = vmatpush.msrb.mxu0 %v1136_v10 }
  0x5c   : > { %395 = vmatpush.msrb.mxu1 %v1143_v12  ;;  %468 = vmatpush.msrb.mxu3 %v1153_v16 }
  0x5d   : > { %421 = vmatpush.msrb.mxu2 %v1140_v11  ;;  %350 = vmatpush.msrb.mxu0 %v1140_v11 }
  0x5e   : > { %396 = vmatpush.msrb.mxu1 %v1145_v13  ;;  %469 = vmatpush.msrb.mxu3 %v1161_v18 }
  0x5f   : > { %422 = vmatpush.msrb.mxu2 %v1148_v14  ;;  %351 = vmatpush.msrb.mxu0 %v1148_v14 }
  0x60   : > { %397 = vmatpush.msrb.mxu1 %v1153_v16  ;;  %470 = vmatpush.msrb.mxu3 %v1169_v21 }
  0x61   : > { %423 = vmatpush.msrb.mxu2 %v1156_v17  ;;  %352 = vmatpush.msrb.mxu0 %v1156_v17 }
  0x62   : > { %398 = vmatpush.msrb.mxu1 %v1161_v18  ;;  %471 = vmatpush.msrb.mxu3 %v1177_v23 }
  0x63   : > { %424 = vmatpush.msrb.mxu2 %v1164_v19  ;;  %353 = vmatpush.msrb.mxu0 %v1164_v19 }
  0x64   : > { %399 = vmatpush.msrb.mxu1 %v1169_v21  ;;  %472 = vmatpush.msrb.mxu3 %v1185_v26 }
  0x65   : > { %425 = vmatpush.msrb.mxu2 %v1172_v22  ;;  %354 = vmatpush.msrb.mxu0 %v1172_v22 }
  0x66   : > { %400 = vmatpush.msrb.mxu1 %v1177_v23  ;;  %473 = vmatpush.msrb.mxu3 %v1193_v28 }
  0x67   : > { %426 = vmatpush.msrb.mxu2 %v1180_v24  ;;  %355 = vmatpush.msrb.mxu0 %v1180_v24 }
  0x68   : > { %401 = vmatpush.msrb.mxu1 %v1185_v26  ;;  %474 = vmatpush.msrb.mxu3 %v1201_v30 }
  0x69   : > { %427 = vmatpush.msrb.mxu2 %v1188_v27  ;;  %356 = vmatpush.msrb.mxu0 %v1188_v27 }
  0x6a   : > { %402 = vmatpush.msrb.mxu1 %v1193_v28  ;;  %475 = vmatpush.msrb.mxu3 %v1209_v32 }
  0x6b   : > { %428 = vmatpush.msrb.mxu2 %v1196_v29  ;;  %357 = vmatpush.msrb.mxu0 %v1196_v29 }
  0x6c   : > { %403 = vmatpush.msrb.mxu1 %v1201_v30  ;;  %476 = vmatpush.msrb.mxu3 %v1217_v34 }
  0x6d   : > { %429 = vmatpush.msrb.mxu2 %v1204_v31  ;;  %358 = vmatpush.msrb.mxu0 %v1204_v31 }
  0x6e   : > { %404 = vmatpush.msrb.mxu1 %v1209_v32  ;;  %477 = vmatpush.msrb.mxu3 %v1225_v36 }
  0x6f   : > { %430 = vmatpush.msrb.mxu2 %v1212_v33  ;;  %359 = vmatpush.msrb.mxu0 %v1212_v33 }
  0x70   : > { %405 = vmatpush.msrb.mxu1 %v1217_v34  ;;  %478 = vmatpush.msrb.mxu3 %v1294_v40 }
  0x71   : > { %431 = vmatpush.msrb.mxu2 %v1220_v35  ;;  %360 = vmatpush.msrb.mxu0 %v1220_v35 }
  0x72   : > { %406 = vmatpush.msrb.mxu1 %v1225_v36  ;;  %479 = vmatpush.msrb.mxu3 %v1298_v41 }
  0x73   : > { %432 = vmatpush.msrb.mxu2 %v1228_v37  ;;  %361 = vmatpush.msrb.mxu0 %v1228_v37 }
  0x74   : > { %407 = vmatpush.msrb.mxu1 %v1294_v40  ;;  %480 = vmatpush.msrb.mxu3 %v1302_v42 }
  0x75   : > { %433 = vmatpush.msrb.mxu2 %v1234_v38  ;;  %362 = vmatpush.msrb.mxu0 %v1234_v38 }
  0x76   : > { %408 = vmatpush.msrb.mxu1 %v1298_v41  ;;  %481 = vmatpush.msrb.mxu3 %v1306_v43 }
  0x77   : > { %489 = vmatpush.msra.mxu0 %v1130_v4 }
  0x78   : > { %409 = vmatpush.msrb.mxu1 %v1302_v42 }
  0x79   : > { %490 = vmatpush.msra.mxu0 %v1132_v9 }
  0x7a   : > { %410 = vmatpush.msrb.mxu1 %v1306_v43 }
  0x7b   : > { %491 = vmatpush.msra.mxu0 %v1136_v10 }
  0x7c   : > { %537 = vmatpush.msra.mxu1 %v1143_v12 }
  0x7d   : > { %492 = vmatpush.msra.mxu0 %v1140_v11 }
  0x7e   : > { %538 = vmatpush.msra.mxu1 %v1145_v13 }
  0x7f   : > { %493 = vmatpush.msra.mxu0 %v1148_v14 }
  0x80   : > { %539 = vmatpush.msra.mxu1 %v1153_v16 }
  0x81   : > { %494 = vmatpush.msra.mxu0 %v1156_v17 }
  0x82   : > { %540 = vmatpush.msra.mxu1 %v1161_v18 }
  0x83   : > { %495 = vmatpush.msra.mxu0 %v1164_v19 }
  0x84   : > { %541 = vmatpush.msra.mxu1 %v1169_v21 }
  0x85   : > { %496 = vmatpush.msra.mxu0 %v1172_v22 }
  0x86   : > { %542 = vmatpush.msra.mxu1 %v1177_v23 }
  0x87   : > { %497 = vmatpush.msra.mxu0 %v1180_v24 }
  0x88   : > { %543 = vmatpush.msra.mxu1 %v1185_v26 }
  0x89   : > { %498 = vmatpush.msra.mxu0 %v1188_v27 }
  0x8a   : > { %544 = vmatpush.msra.mxu1 %v1193_v28 }
  0x8b   : > { %499 = vmatpush.msra.mxu0 %v1196_v29 }
  0x8c   : > { %545 = vmatpush.msra.mxu1 %v1201_v30 }
  0x8d   : > { %500 = vmatpush.msra.mxu0 %v1204_v31 }
  0x8e   : > { %546 = vmatpush.msra.mxu1 %v1209_v32 }
  0x8f   : > { %501 = vmatpush.msra.mxu0 %v1212_v33 }
  0x90   : > { %547 = vmatpush.msra.mxu1 %v1217_v34 }
  0x91   : > { %502 = vmatpush.msra.mxu0 %v1220_v35 }
  0x92   : > { %548 = vmatpush.msra.mxu1 %v1225_v36 }
  0x93   : > { %503 = vmatpush.msra.mxu0 %v1228_v37 }
  0x94   : > { %549 = vmatpush.msra.mxu1 %v1294_v40 }
  0x95   : > { %504 = vmatpush.msra.mxu0 %v1234_v38 }
  0x96   : > { %550 = vmatpush.msra.mxu1 %v1298_v41 }
  0x98   : > { %551 = vmatpush.msra.mxu1 %v1302_v42 }
  0x9a   : > { %552 = vmatpush.msra.mxu1 %v1306_v43 }
  0xd3   : > { %v216_v54 = vpop.f32.mrf.mxu0 }
  0xd4   : > { %v219_v55 = vadd.f32 %v216_v54, %v1345_v53 }
  0xd6   : > { %v220_v15 = vadd.f32 %v1016_v25, %v219_v55 }
  0xd7   : > { %v270_v1 = vpop.f32.mrf.mxu1 }
  0xd8   : > { %v1356_v20 = vadd.f32 %v230_v56, %v220_v15  ;;  %v301_v3 = vrot.slane %v270_v1, 7 }
  0xda   : > { %v232_v57 = vmul.f32 0.2, %v1356_v20  ;;  %vm273_vm1 = vcmp.ge.f32.partialorder %v1356_v20, 30.0 }
  0xdb   : > { %858 = vmatmul.msk.f32.vlgmr.msra.gmra.mxu2 %vm273_vm1, %v1037_v39  ;;  %859 = vmatmul.msk.f32.vlgmr.msra.gmra.mxu3 %vm273_vm1, %v1037_v39  ;;  %v304_v62 = vsel %vm273_vm1, -65.0, %v1356_v20 }
  0xdc   : > { %v233_v25 = vsub.f32 %v232_v57, %v223_v52  ;;  %560 = vmatpush.msra.mxu2 %v1130_v4  ;;  %608 = vmatpush.msra.mxu3 %v1143_v12  ;;  %v307_v63 = vmul.f32 0.04, %v304_v62  ;;  %v310_v7 = vmul.f32 5.0, %v304_v62 }
  0xde   : > { %v234_v58 = vmul.f32 0.02, %v233_v25  ;;  %561 = vmatpush.msra.mxu2 %v1132_v9  ;;  %609 = vmatpush.msra.mxu3 %v1145_v13  ;;  %v308_v0 = vmul.f32 %v307_v63, %v304_v62 }
  0xe0   : > { %v235_v59 = vadd.f32 %v234_v58, %v223_v52  ;;  %562 = vmatpush.msra.mxu2 %v1136_v10  ;;  %610 = vmatpush.msra.mxu3 %v1153_v16  ;;  %v309_v5 = vadd.f32 %v308_v0, %v304_v62 }
  0xe2   : > { %v305_v60 = vadd.f32 8.0, %v235_v59  ;;  %563 = vmatpush.msra.mxu2 %v1140_v11  ;;  %611 = vmatpush.msra.mxu3 %v1161_v18  ;;  %v311_v44 = vadd.f32 %v310_v7, %v309_v5 }
  0xe4   : > { %v1383_v61 = vsel %vm273_vm1, %v305_v60, %v235_v59  ;;  %564 = vmatpush.msra.mxu2 %v1148_v14  ;;  %612 = vmatpush.msra.mxu3 %v1169_v21  ;;  %v312_v46 = vadd.f32 140.0, %v311_v44 }
  0xe6   : > { %565 = vmatpush.msra.mxu2 %v1156_v17  ;;  %613 = vmatpush.msra.mxu3 %v1177_v23  ;;  %v313_v47 = vsub.f32 %v312_v46, %v1383_v61 }
  0xe8   : > { %566 = vmatpush.msra.mxu2 %v1164_v19  ;;  %614 = vmatpush.msra.mxu3 %v1185_v26 }
  0xea   : > { %567 = vmatpush.msra.mxu2 %v1172_v22  ;;  %615 = vmatpush.msra.mxu3 %v1193_v28 }
  0xec   : > { %568 = vmatpush.msra.mxu2 %v1180_v24  ;;  %616 = vmatpush.msra.mxu3 %v1201_v30 }
  0xee   : > { %569 = vmatpush.msra.mxu2 %v1188_v27  ;;  %617 = vmatpush.msra.mxu3 %v1209_v32 }
  0xf0   : > { %570 = vmatpush.msra.mxu2 %v1196_v29  ;;  %618 = vmatpush.msra.mxu3 %v1217_v34 }
  0xf2   : > { %571 = vmatpush.msra.mxu2 %v1204_v31  ;;  %619 = vmatpush.msra.mxu3 %v1225_v36 }
  0xf4   : > { %572 = vmatpush.msra.mxu2 %v1212_v33  ;;  %620 = vmatpush.msra.mxu3 %v1294_v40 }
  0xf6   : > { %573 = vmatpush.msra.mxu2 %v1220_v35  ;;  %621 = vmatpush.msra.mxu3 %v1298_v41 }
  0xf8   : > { %574 = vmatpush.msra.mxu2 %v1228_v37  ;;  %622 = vmatpush.msra.mxu3 %v1302_v42 }
  0xfa   : > { %575 = vmatpush.msra.mxu2 %v1234_v38  ;;  %623 = vmatpush.msra.mxu3 %v1306_v43 }
 0x15e   : > { %v293_v2 = vpop.f32.mrf.mxu2  ;;  %v341_v58 = vpop.f32.mrf.mxu3 }
 0x15f   : > { %v297_v6 = vrot.slane %v293_v2, 7  ;;  %v372_v62 = vrot.slane %v341_v58, 6 }
 0x161   : > { %v299_v8 = vadd.f32 %v297_v6, %v1345_v53 }
 0x163   : > { %v303_v45 = vadd.f32 %v301_v3, %v299_v8 }
 0x165   : > { %315 = vst [vmem:[#allocation1] sm:$0xff] %v303_v45 }
 0x16c   : > { %v317_v48 = vld [vmem:[#allocation1 + $0x1] ss:$9 sm:$0xff] }
 0x16d   : > { %v1426_v49 = vadd.f32 %v317_v48, %v313_v47 }
 0x16f   : > { %v320_v50 = vmul.f32 0.2, %v1426_v49  ;;  %vm344_vm2 = vcmp.ge.f32.partialorder %v1426_v49, 30.0  ;;  %v771_v3 = vperm.slane %v1426_v49, 0 }
 0x170   : > { %861 = vmatmul.msk.f32.vlgmr.msrb.gmra.mxu0 %vm344_vm2, %v1037_v39  ;;  %v375_v51 = vsel %vm344_vm2, -65.0, %v1426_v49  ;;  %862 = vmatmul.msk.f32.vlgmr.msrb.gmra.mxu1 %vm344_vm2, %v1037_v39 }
 0x171   : > { %v321_v52 = vsub.f32 %v320_v50, %v1383_v61  ;;  %631 = vmatpush.msrb.mxu0 %v1130_v4  ;;  %679 = vmatpush.msrb.mxu1 %v1143_v12  ;;  %v378_v57 = vmul.f32 0.04, %v375_v51  ;;  %v381_v63 = vmul.f32 5.0, %v375_v51  ;;  %v792_v46 = vsel %vm791_vm3, %v1356_v20, %v771_v3 }
 0x173   : > { %v322_v54 = vmul.f32 0.02, %v321_v52  ;;  %632 = vmatpush.msrb.mxu0 %v1132_v9  ;;  %680 = vmatpush.msrb.mxu1 %v1145_v13  ;;  %v379_v25 = vmul.f32 %v378_v57, %v375_v51 }
 0x175   : > { %v323_v55 = vadd.f32 %v322_v54, %v1383_v61  ;;  %633 = vmatpush.msrb.mxu0 %v1136_v10  ;;  %681 = vmatpush.msrb.mxu1 %v1153_v16  ;;  %v380_v60 = vadd.f32 %v379_v25, %v375_v51 }
 0x177   : > { %v376_v56 = vadd.f32 8.0, %v323_v55  ;;  %634 = vmatpush.msrb.mxu0 %v1140_v11  ;;  %682 = vmatpush.msrb.mxu1 %v1161_v18  ;;  %v382_v1 = vadd.f32 %v381_v63, %v380_v60 }
 0x179   : > { %v377_v15 = vsel %vm344_vm2, %v376_v56, %v323_v55  ;;  %635 = vmatpush.msrb.mxu0 %v1148_v14  ;;  %683 = vmatpush.msrb.mxu1 %v1169_v21  ;;  %v383_v5 = vadd.f32 140.0, %v382_v1 }
 0x17b   : > { %636 = vmatpush.msrb.mxu0 %v1156_v17  ;;  %684 = vmatpush.msrb.mxu1 %v1177_v23  ;;  %v384_v6 = vsub.f32 %v383_v5, %v377_v15 }
 0x17d   : > { %637 = vmatpush.msrb.mxu0 %v1164_v19  ;;  %685 = vmatpush.msrb.mxu1 %v1185_v26 }
 0x17f   : > { %638 = vmatpush.msrb.mxu0 %v1172_v22  ;;  %686 = vmatpush.msrb.mxu1 %v1193_v28 }
 0x181   : > { %639 = vmatpush.msrb.mxu0 %v1180_v24  ;;  %687 = vmatpush.msrb.mxu1 %v1201_v30 }
 0x183   : > { %640 = vmatpush.msrb.mxu0 %v1188_v27  ;;  %688 = vmatpush.msrb.mxu1 %v1209_v32 }
 0x185   : > { %641 = vmatpush.msrb.mxu0 %v1196_v29  ;;  %689 = vmatpush.msrb.mxu1 %v1217_v34 }
 0x187   : > { %642 = vmatpush.msrb.mxu0 %v1204_v31  ;;  %690 = vmatpush.msrb.mxu1 %v1225_v36 }
 0x189   : > { %643 = vmatpush.msrb.mxu0 %v1212_v33  ;;  %691 = vmatpush.msrb.mxu1 %v1294_v40 }
 0x18b   : > { %644 = vmatpush.msrb.mxu0 %v1220_v35  ;;  %692 = vmatpush.msrb.mxu1 %v1298_v41 }
 0x18d   : > { %645 = vmatpush.msrb.mxu0 %v1228_v37  ;;  %693 = vmatpush.msrb.mxu1 %v1302_v42 }
 0x18f   : > { %646 = vmatpush.msrb.mxu0 %v1234_v38  ;;  %694 = vmatpush.msrb.mxu1 %v1306_v43 }
 0x1ed   : > { %v364_v59 = vpop.f32.mrf.mxu0 }
 0x1ee   : > { %v368_v61 = vrot.slane %v364_v59, 6 }
 0x1f0   : > { %v370_v0 = vadd.f32 %v368_v61, %v1345_v53 }
 0x1f2   : > { %v374_v2 = vadd.f32 %v372_v62, %v370_v0 }
 0x1f4   : > { %386 = vst [vmem:[#allocation1] sm:$0xff] %v374_v2 }
 0x1fb   : > { %v388_v7 = vld [vmem:[#allocation1 + $0x2] ss:$9 sm:$0xff] }
 0x1fc   : > { %v390_v8 = vadd.f32 %v388_v7, %v384_v6 }
 0x1fe   : > { %v391_v44 = vmul.f32 0.2, %v390_v8  ;;  %vm415_vm5 = vcmp.ge.f32.partialorder %v390_v8, 30.0  ;;  %v774_v45 = vperm.slane %v390_v8, 0 }
 0x1ff   : > { %864 = vmatmul.msk.f32.vlgmr.msrb.gmra.mxu2 %vm415_vm5, %v1037_v39  ;;  %v446_v47 = vsel %vm415_vm5, -65.0, %v390_v8  ;;  %865 = vmatmul.msk.f32.vlgmr.msrb.gmra.mxu3 %vm415_vm5, %v1037_v39 }
 0x200   : > { %v392_v48 = vsub.f32 %v391_v44, %v377_v15  ;;  %v794_v50 = vsel %vm793_vm4, %v792_v46, %v774_v45  ;;  %702 = vmatpush.msrb.mxu2 %v1130_v4  ;;  %750 = vmatpush.msrb.mxu3 %v1143_v12  ;;  %v449_v4 = vmul.f32 0.04, %v446_v47 }
 0x202   : > { %v393_v49 = vmul.f32 0.02, %v392_v48  ;;  %703 = vmatpush.msrb.mxu2 %v1132_v9  ;;  %751 = vmatpush.msrb.mxu3 %v1145_v13  ;;  %v450_v9 = vmul.f32 %v449_v4, %v446_v47 }
 0x204   : > { %v394_v20 = vadd.f32 %v393_v49, %v377_v15  ;;  %704 = vmatpush.msrb.mxu2 %v1136_v10  ;;  %752 = vmatpush.msrb.mxu3 %v1153_v16  ;;  %v412_v10 = vpop.f32.mrf.mxu1  ;;  %v451_v12 = vadd.f32 %v450_v9, %v446_v47  ;;  %v452_v16 = vmul.f32 5.0, %v446_v47 }
 0x206   : > { %v447_v51 = vadd.f32 8.0, %v394_v20  ;;  %705 = vmatpush.msrb.mxu2 %v1140_v11  ;;  %753 = vmatpush.msrb.mxu3 %v1161_v18  ;;  %v453_v18 = vadd.f32 %v452_v16, %v451_v12 }
 0x208   : > { %v448_v52 = vsel %vm415_vm5, %v447_v51, %v394_v20  ;;  %706 = vmatpush.msrb.mxu2 %v1148_v14  ;;  %754 = vmatpush.msrb.mxu3 %v1169_v21  ;;  %v443_v14 = vrot.slane %v412_v10, 5  ;;  %v454_v21 = vadd.f32 140.0, %v453_v18 }
 0x20a   : > { %707 = vmatpush.msrb.mxu2 %v1156_v17  ;;  %755 = vmatpush.msrb.mxu3 %v1177_v23 }
 0x20c   : > { %708 = vmatpush.msrb.mxu2 %v1164_v19  ;;  %756 = vmatpush.msrb.mxu3 %v1185_v26 }
 0x20e   : > { %709 = vmatpush.msrb.mxu2 %v1172_v22  ;;  %757 = vmatpush.msrb.mxu3 %v1193_v28  ;;  %v455_v22 = vsub.f32 %v454_v21, %v448_v52 }
 0x210   : > { %710 = vmatpush.msrb.mxu2 %v1180_v24  ;;  %758 = vmatpush.msrb.mxu3 %v1201_v30 }
 0x212   : > { %711 = vmatpush.msrb.mxu2 %v1188_v27  ;;  %759 = vmatpush.msrb.mxu3 %v1209_v32 }
 0x214   : > { %712 = vmatpush.msrb.mxu2 %v1196_v29  ;;  %760 = vmatpush.msrb.mxu3 %v1217_v34 }
 0x216   : > { %713 = vmatpush.msrb.mxu2 %v1204_v31  ;;  %761 = vmatpush.msrb.mxu3 %v1225_v36 }
 0x218   : > { %714 = vmatpush.msrb.mxu2 %v1212_v33  ;;  %762 = vmatpush.msrb.mxu3 %v1294_v40 }
 0x21a   : > { %715 = vmatpush.msrb.mxu2 %v1220_v35  ;;  %763 = vmatpush.msrb.mxu3 %v1298_v41 }
 0x21c   : > { %716 = vmatpush.msrb.mxu2 %v1228_v37  ;;  %764 = vmatpush.msrb.mxu3 %v1302_v42 }
 0x21e   : > { %717 = vmatpush.msrb.mxu2 %v1234_v38  ;;  %765 = vmatpush.msrb.mxu3 %v1306_v43 }
 0x282   : > { %v435_v11 = vpop.f32.mrf.mxu2  ;;  %v483_v37 = vpop.f32.mrf.mxu3 }
 0x283   : > { %v439_v13 = vrot.slane %v435_v11, 5  ;;  %v514_v42 = vrot.slane %v483_v37, 4 }
 0x285   : > { %v441_v17 = vadd.f32 %v439_v13, %v1345_v53 }
 0x287   : > { %v445_v19 = vadd.f32 %v443_v14, %v441_v17 }
 0x289   : > { %457 = vst [vmem:[#allocation1] sm:$0xff] %v445_v19 }
 0x290   : > { %v459_v23 = vld [vmem:[#allocation1 + $0x3] ss:$9 sm:$0xff] }
 0x291   : > { %v461_v24 = vadd.f32 %v459_v23, %v455_v22 }
 0x293   : > { %v462_v26 = vmul.f32 0.2, %v461_v24  ;;  %vm486_vm7 = vcmp.ge.f32.partialorder %v461_v24, 30.0  ;;  %v777_v27 = vperm.slane %v461_v24, 0 }
 0x294   : > { %867 = vmatmul.msk.f32.vlgmr.msra.gmra.mxu0 %vm486_vm7, %v1037_v39  ;;  %v517_v28 = vsel %vm486_vm7, -65.0, %v461_v24  ;;  %868 = vmatmul.msk.f32.vlgmr.msra.gmra.mxu1 %vm486_vm7, %v1037_v39 }
 0x295   : > { %v463_v29 = vsub.f32 %v462_v26, %v448_v52  ;;  %v796_v30 = vsel %vm795_vm6, %v794_v50, %v777_v27  ;;  %v520_v35 = vmul.f32 0.04, %v517_v28  ;;  %v523_v43 = vmul.f32 5.0, %v517_v28 }
 0x297   : > { %v464_v31 = vmul.f32 0.02, %v463_v29  ;;  %v521_v36 = vmul.f32 %v520_v35, %v517_v28 }
 0x299   : > { %v465_v32 = vadd.f32 %v464_v31, %v448_v52  ;;  %v522_v40 = vadd.f32 %v521_v36, %v517_v28 }
 0x29b   : > { %v518_v33 = vadd.f32 8.0, %v465_v32  ;;  %v524_v55 = vadd.f32 %v523_v43, %v522_v40 }
 0x29d   : > { %v519_v34 = vsel %vm486_vm7, %v518_v33, %v465_v32  ;;  %v525_v15 = vadd.f32 140.0, %v524_v55 }
 0x29f   : > { %v526_v57 = vsub.f32 %v525_v15, %v519_v34 }
 0x311   : > { %v506_v38 = vpop.f32.mrf.mxu0  ;;  %v554_v7 = vpop.f32.mrf.mxu1 }
 0x312   : > { %v510_v41 = vrot.slane %v506_v38, 4  ;;  %v585_v46 = vrot.slane %v554_v7, 3 }
 0x314   : > { %v512_v54 = vadd.f32 %v510_v41, %v1345_v53 }
 0x316   : > { %v516_v56 = vadd.f32 %v514_v42, %v512_v54 }
 0x318   : > { %528 = vst [vmem:[#allocation1] sm:$0xff] %v516_v56 }
 0x31f   : > { %v530_v25 = vld [vmem:[#allocation1 + $0x4] ss:$9 sm:$0xff] }
 0x320   : > { %v532_v58 = vadd.f32 %v530_v25, %v526_v57 }
 0x322   : > { %v533_v59 = vmul.f32 0.2, %v532_v58  ;;  %vm557_vm9 = vcmp.ge.f32.partialorder %v532_v58, 30.0  ;;  %v780_v60 = vperm.slane %v532_v58, 0 }
 0x323   : > { %870 = vmatmul.msk.f32.vlgmr.msra.gmra.mxu2 %vm557_vm9, %v1037_v39  ;;  %v588_v61 = vsel %vm557_vm9, -65.0, %v532_v58  ;;  %871 = vmatmul.msk.f32.vlgmr.msra.gmra.mxu3 %vm557_vm9, %v1037_v39 }
 0x324   : > { %v534_v62 = vsub.f32 %v533_v59, %v519_v34  ;;  %v798_v63 = vsel %vm797_vm8, %v796_v30, %v780_v60  ;;  %v591_v6 = vmul.f32 0.04, %v588_v61  ;;  %v594_v47 = vmul.f32 5.0, %v588_v61 }
 0x326   : > { %v535_v0 = vmul.f32 0.02, %v534_v62  ;;  %v592_v3 = vmul.f32 %v591_v6, %v588_v61 }
 0x328   : > { %v536_v1 = vadd.f32 %v535_v0, %v519_v34  ;;  %v593_v44 = vadd.f32 %v592_v3, %v588_v61 }
 0x32a   : > { %v589_v2 = vadd.f32 8.0, %v536_v1  ;;  %v595_v50 = vadd.f32 %v594_v47, %v593_v44 }
 0x32c   : > { %v590_v5 = vsel %vm557_vm9, %v589_v2, %v536_v1  ;;  %v596_v20 = vadd.f32 140.0, %v595_v50 }
 0x32e   : > { %v597_v51 = vsub.f32 %v596_v20, %v590_v5 }
 0x3a6   : > { %v577_v8 = vpop.f32.mrf.mxu2  ;;  %v625_v22 = vpop.f32.mrf.mxu3 }
 0x3a7   : > { %v581_v45 = vrot.slane %v577_v8, 3  ;;  %v656_v27 = vrot.slane %v625_v22, 2 }
 0x3a9   : > { %v583_v48 = vadd.f32 %v581_v45, %v1345_v53 }
 0x3ab   : > { %v587_v49 = vadd.f32 %v585_v46, %v583_v48 }
 0x3ad   : > { %599 = vst [vmem:[#allocation1] sm:$0xff] %v587_v49 }
 0x3b4   : > { %v601_v52 = vld [vmem:[#allocation1 + $0x5] ss:$9 sm:$0xff] }
 0x3b5   : > { %v603_v4 = vadd.f32 %v601_v52, %v597_v51 }
 0x3b7   : > { %v604_v9 = vmul.f32 0.2, %v603_v4  ;;  %vm628_vm11 = vcmp.ge.f32.partialorder %v603_v4, 30.0  ;;  %v783_v10 = vperm.slane %v603_v4, 0 }
 0x3b8   : > { %873 = vmatmul.msk.f32.vlgmr.msrb.gmra.mxu0 %vm628_vm11, %v1037_v39  ;;  %v659_v11 = vsel %vm628_vm11, -65.0, %v603_v4  ;;  %874 = vmatmul.msk.f32.vlgmr.msrb.gmra.mxu1 %vm628_vm11, %v1037_v39 }
 0x3b9   : > { %v605_v12 = vsub.f32 %v604_v9, %v590_v5  ;;  %v800_v13 = vsel %vm799_vm10, %v798_v63, %v783_v10  ;;  %v662_v19 = vmul.f32 0.04, %v659_v11  ;;  %v665_v28 = vmul.f32 5.0, %v659_v11 }
 0x3bb   : > { %v606_v14 = vmul.f32 0.02, %v605_v12  ;;  %v663_v21 = vmul.f32 %v662_v19, %v659_v11 }
 0x3bd   : > { %v607_v16 = vadd.f32 %v606_v14, %v590_v5  ;;  %v664_v24 = vadd.f32 %v663_v21, %v659_v11 }
 0x3bf   : > { %v660_v17 = vadd.f32 8.0, %v607_v16  ;;  %v666_v30 = vadd.f32 %v665_v28, %v664_v24 }
 0x3c1   : > { %v661_v18 = vsel %vm628_vm11, %v660_v17, %v607_v16  ;;  %v667_v32 = vadd.f32 140.0, %v666_v30 }
 0x3c3   : > { %v668_v33 = vsub.f32 %v667_v32, %v661_v18 }
 0x435   : > { %v648_v23 = vpop.f32.mrf.mxu0  ;;  %v696_v61 = vpop.f32.mrf.mxu1 }
 0x436   : > { %v652_v26 = vrot.slane %v648_v23, 2  ;;  %v727_v1 = vrot.slane %v696_v61, 1 }
 0x438   : > { %v654_v29 = vadd.f32 %v652_v26, %v1345_v53 }
 0x43a   : > { %v658_v31 = vadd.f32 %v656_v27, %v654_v29 }
 0x43c   : > { %670 = vst [vmem:[#allocation1] sm:$0xff] %v658_v31 }
 0x443   : > { %v672_v34 = vld [vmem:[#allocation1 + $0x6] ss:$9 sm:$0xff] }
 0x444   : > { %v674_v35 = vadd.f32 %v672_v34, %v668_v33 }
 0x446   : > { %v675_v36 = vmul.f32 0.2, %v674_v35  ;;  %vm699_vm13 = vcmp.ge.f32.partialorder %v674_v35, 30.0  ;;  %v786_v37 = vperm.slane %v674_v35, 0 }
 0x447   : > { %876 = vmatmul.msk.f32.vlgmr.msrb.gmra.mxu2 %vm699_vm13, %v1037_v39  ;;  %v730_v38 = vsel %vm699_vm13, -65.0, %v674_v35  ;;  %877 = vmatmul.msk.f32.vlgmr.msrb.gmra.mxu3 %vm699_vm13, %v1037_v39 }
 0x448   : > { %v676_v40 = vsub.f32 %v675_v36, %v661_v18  ;;  %v733_v41 = vmul.f32 0.04, %v730_v38  ;;  %v802_v42 = vsel %vm801_vm12, %v800_v13, %v786_v37  ;;  %v736_v15 = vmul.f32 5.0, %v730_v38 }
 0x44a   : > { %v677_v43 = vmul.f32 0.02, %v676_v40  ;;  %v734_v54 = vmul.f32 %v733_v41, %v730_v38 }
 0x44c   : > { %v678_v55 = vadd.f32 %v677_v43, %v661_v18  ;;  %v735_v56 = vadd.f32 %v734_v54, %v730_v38 }
 0x44e   : > { %v731_v57 = vadd.f32 8.0, %v678_v55  ;;  %v737_v25 = vadd.f32 %v736_v15, %v735_v56 }
 0x450   : > { %v732_v58 = vsel %vm699_vm13, %v731_v57, %v678_v55  ;;  %v738_v59 = vadd.f32 140.0, %v737_v25 }
 0x452   : > { %v739_v60 = vsub.f32 %v738_v59, %v732_v58 }
 0x4ca   : > { %v719_v62 = vpop.f32.mrf.mxu2  ;;  %v767_v63 = vpop.f32.mrf.mxu3  }
 0x4cb   : > { %v723_v0 = vrot.slane %v719_v62, 1  ;;  %v1549_v25 = vmov %v767_v63  ;;  %809 = vst [vmem:[#allocation5] sm:$0x1] (%p170_p0), %v767_v63 }
 0x4cd   : > { %v725_v39 = vadd.f32 %v723_v0, %v1345_v53 }
 0x4cf   : > { %v729_v2 = vadd.f32 %v727_v1, %v725_v39 }
 0x4d1   : > { %741 = vst [vmem:[#allocation1] sm:$0xff] %v729_v2 }
 0x4d8   : > { %v743_v5 = vld [vmem:[#allocation1 + $0x7] ss:$9 sm:$0xff] }
 0x4d9   : > { %v745_v6 = vadd.f32 %v743_v5, %v739_v60  }
 0x4db   : > { %v746_v3 = vmul.f32 0.2, %v745_v6  ;;  %v789_v7 = vperm.slane %v745_v6, 0  ;;  %v1551_v15 = vmov %v745_v6  ;;  %807 = vst [vmem:[#allocation3] sm:$0x1] (%p170_p0), %v745_v6 }
 0x4dd   : > { %v747_v8 = vsub.f32 %v746_v3, %v732_v58  ;;  %v804_v44 = vsel %vm803_vm14, %v802_v42, %v789_v7 }
 0x4de   : > { %806 = vst [vmem:[%s805_s22] sm:$0xff] %v804_v44 }
 0x4df   : > { %v748_v45 = vmul.f32 0.02, %v747_v8  ;;  %172 = sbr.rel (!%p170_p0) target bundleno = 49 (0x31), region = 54 }
 0x4e0   :  { %822 = dma.vmem_to_hbm [thread:$0]  (%p170_p0), %s815_s27, 512, %s817_s25, [#allocation9], %s1031_s14, %s1031_s14, %s1032_s15  }
 0x4e1   : > { %v749_v46 = vadd.f32 %v748_v45, %v732_v58  }
 0x4e3   : > { %v1550_v20 = vmov %v749_v46  ;;  %808 = vst [vmem:[#allocation4] sm:$0x1] (%p170_p0), %v749_v46 }
 0x4e4   :  { %1012 = dma.done.wait [#allocation9], 512  }
 0x4e5   :  { %1013 = vsyncadd [#allocation9], 4294966784 }
 0x4e6   :  { %827 = vsyncpa [#allocation8], 1 }
 0x4e7   :  { %828 = vsyncpa [#allocation9], 1 }
 0x4e8   :  { %829 = vsyncmov [#allocation6] }
 0x4eb   :  { %s830_s28 = vpop.sfrf %829 }
 0x4ec   :  { %p878_p1 = scmp.ne.s32.totalorder %s830_s28, 0 }
 0x4ee   :  { %834 = shalt.err (%p878_p1)  }

</bundles_post_ra>
